<compile_context>
chip_gen: v5e
topology: v5e:2x2
jax: 0.10.0
libtpu: 0.0.40
codegen_flags: <defaults>
</compile_context>

<pallas_src>
import functools
import math

import jax
import jax.numpy as jnp
from jax.experimental import pallas as pl
from jax.experimental.pallas import tpu as pltpu

# Keep MXU matmuls at full f32 so the kernel and the pure-JAX reference agree
# to tight tolerances (both sides pick this default up at trace time).
jax.config.update("jax_default_matmul_precision", "highest")


def _mamba_block_kernel(x_ref, w_in_ref, conv_w_ref, conv_b_ref, w_x_ref,
                        w_dt_ref, b_dt_ref, a_log_ref, d_ref, w_out_ref,
                        o_ref, *, l, d_model, d_inner, dt_rank, d_state,
                        d_conv):
    n = d_state
    x = x_ref[0].astype(jnp.float32)                              # (l, d_model)

    # ---------------- in_proj: (l, d_model) @ (d_model, 2*d_inner) ----------
    xr = jnp.dot(x, w_in_ref[...].astype(jnp.float32),
                 preferred_element_type=jnp.float32)              # (l, 2*d_inner)
    xz = xr[:, :d_inner]                                          # (l, d_inner)
    res = xr[:, d_inner:]                                         # (l, d_inner)

    # ------- depthwise causal conv1d (kernel=d_conv, padding=d_conv-1) ------
    conv_w = conv_w_ref[...].astype(jnp.float32)                  # (d_conv, d_inner)
    conv_b = conv_b_ref[...].astype(jnp.float32)                  # (1, d_inner)
    zpad = jnp.zeros((d_conv - 1, d_inner), jnp.float32)
    xpad = jnp.concatenate([zpad, xz], axis=0)                    # (l+K-1, d_inner)
    acc = jnp.zeros((l, d_inner), jnp.float32) + conv_b
    for k in range(d_conv):                                       # static unroll
        acc = acc + xpad[k:k + l, :] * conv_w[k:k + 1, :]
    u = acc * (1.0 / (1.0 + jnp.exp(-acc)))                       # SiLU

    # ---------------- x_proj -> (delta_r | B | C) ----------------------------
    x_dbl = jnp.dot(u, w_x_ref[...].astype(jnp.float32),
                    preferred_element_type=jnp.float32)           # (l, dt_rank+2n)
    delta_r = x_dbl[:, :dt_rank]                                  # (l, dt_rank)
    B = x_dbl[:, dt_rank:dt_rank + n]                             # (l, n)
    C = x_dbl[:, dt_rank + n:dt_rank + 2 * n]                     # (l, n)

    # ---------------- dt_proj + softplus -------------------------------------
    w_dt = w_dt_ref[...].astype(jnp.float32)                      # (dt_rank, d_inner)
    dt_pre = jnp.zeros((l, d_inner), jnp.float32) + b_dt_ref[...].astype(jnp.float32)
    for r in range(dt_rank):                                      # tiny static K
        dt_pre = dt_pre + delta_r[:, r:r + 1] * w_dt[r:r + 1, :]
    delta = jnp.maximum(dt_pre, 0.0) + jnp.log(1.0 + jnp.exp(-jnp.abs(dt_pre)))

    # ---------------- selective scan, state layout (n, d_inner) --------------
    a_t = -jnp.exp(a_log_ref[...].astype(jnp.float32))            # (n, d_inner)
    du = delta * u                                                # (l, d_inner)
    b_t = B.T                                                     # (n, l)
    state = jnp.zeros((n, d_inner), jnp.float32)
    ys = []
    # TODO(synk): for long sequences replace this unrolled recurrence with a
    # chunked scan over a seq grid axis carrying `state` in a VMEM scratch.
    for t in range(l):
        da_t = jnp.exp(delta[t:t + 1, :] * a_t)                   # (n, d_inner)
        dbu_t = b_t[:, t:t + 1] * du[t:t + 1, :]                  # (n, d_inner)
        state = da_t * state + dbu_t
        ys.append(jnp.dot(C[t:t + 1, :], state,
                          preferred_element_type=jnp.float32))    # (1, d_inner)
    y = jnp.concatenate(ys, axis=0)                               # (l, d_inner)
    y = y + u * d_ref[...].astype(jnp.float32)                    # + u * D

    # ---------------- gate with SiLU(res) and out_proj ------------------------
    y = y * (res * (1.0 / (1.0 + jnp.exp(-res))))
    out = jnp.dot(y, w_out_ref[...].astype(jnp.float32),
                  preferred_element_type=jnp.float32)             # (l, d_model)
    o_ref[0] = out.astype(o_ref.dtype)


def mamba_block(x, params, *, d_inner, dt_rank, d_state, d_conv):
    """Fused MambaBlock forward. x: (b, l, d_model)."""
    b, l, d_model = x.shape
    n = d_state

    w_in = params["w_in"]                                 # (d_model, 2*d_inner)
    conv_w = params["conv_w"]                             # (d_conv, d_inner)
    conv_b = params["conv_b"].reshape(1, d_inner)
    w_x = params["w_x"]                                   # (d_inner, dt_rank+2n)
    w_dt = params["w_dt"]                                 # (dt_rank, d_inner)
    b_dt = params["b_dt"].reshape(1, d_inner)
    a_log_t = params["a_log_t"]                           # (n, d_inner)
    D = params["D"].reshape(1, d_inner)
    w_out = params["w_out"]                               # (d_inner, d_model)

    kern = functools.partial(
        _mamba_block_kernel, l=l, d_model=d_model, d_inner=d_inner,
        dt_rank=dt_rank, d_state=d_state, d_conv=d_conv)

    flops = (2 * b * l * (d_model * 2 * d_inner
                          + d_inner * (dt_rank + 2 * n)
                          + dt_rank * d_inner
                          + d_inner * d_model)
             + 8 * b * l * d_inner * n)
    transcendentals = b * l * (d_inner * n + 4 * d_inner)
    bytes_accessed = 4 * (x.size + b * l * d_model
                          + w_in.size + conv_w.size + conv_b.size + w_x.size
                          + w_dt.size + b_dt.size + a_log_t.size + D.size
                          + w_out.size)

    return pl.pallas_call(
        kern,
        out_shape=jax.ShapeDtypeStruct((b, l, d_model), x.dtype),
        grid_spec=pltpu.PrefetchScalarGridSpec(
            num_scalar_prefetch=0,
            grid=(b,),
            in_specs=[
                pl.BlockSpec((1, l, d_model), lambda i: (i, 0, 0)),
                pl.BlockSpec((d_model, 2 * d_inner), lambda i: (0, 0)),
                pl.BlockSpec((d_conv, d_inner), lambda i: (0, 0)),
                pl.BlockSpec((1, d_inner), lambda i: (0, 0)),
                pl.BlockSpec((d_inner, dt_rank + 2 * n), lambda i: (0, 0)),
                pl.BlockSpec((dt_rank, d_inner), lambda i: (0, 0)),
                pl.BlockSpec((1, d_inner), lambda i: (0, 0)),
                pl.BlockSpec((n, d_inner), lambda i: (0, 0)),
                pl.BlockSpec((1, d_inner), lambda i: (0, 0)),
                pl.BlockSpec((d_inner, d_model), lambda i: (0, 0)),
            ],
            out_specs=pl.BlockSpec((1, l, d_model), lambda i: (i, 0, 0)),
        ),
        compiler_params=pltpu.CompilerParams(
            dimension_semantics=("parallel",)),
        cost_estimate=pl.CostEstimate(
            flops=flops, transcendentals=transcendentals,
            bytes_accessed=bytes_accessed),
    )(x, w_in, conv_w, conv_b, w_x, w_dt, b_dt, a_log_t, D, w_out)


# ---------------------------- pure-JAX reference -----------------------------
def mamba_block_ref(x, params, *, d_inner, dt_rank, d_state, d_conv):
    b, l, d_model = x.shape
    n = d_state
    xf = x.astype(jnp.float32)
    xr = xf @ params["w_in"]
    xz, res = xr[..., :d_inner], xr[..., d_inner:]
    xpad = jnp.pad(xz, ((0, 0), (d_conv - 1, 0), (0, 0)))
    conv = jnp.zeros_like(xz) + params["conv_b"]
    for k in range(d_conv):
        conv = conv + xpad[:, k:k + l, :] * params["conv_w"][k]
    u = jax.nn.silu(conv)
    x_dbl = u @ params["w_x"]
    delta_r = x_dbl[..., :dt_rank]
    B = x_dbl[..., dt_rank:dt_rank + n]
    C = x_dbl[..., dt_rank + n:]
    delta = jax.nn.softplus(delta_r @ params["w_dt"] + params["b_dt"])
    A = -jnp.exp(params["a_log_t"]).T                       # (d_inner, n)
    dA = jnp.exp(jnp.einsum("bld,dn->bldn", delta, A))
    dBu = jnp.einsum("bld,bln,bld->bldn", delta, B, u)
    state = jnp.zeros((b, d_inner, n), jnp.float32)
    ys = []
    for t in range(l):
        state = dA[:, t] * state + dBu[:, t]
        ys.append(jnp.einsum("bdn,bn->bd", state, C[:, t]))
    y = jnp.stack(ys, axis=1)
    y = y + u * params["D"]
    y = y * jax.nn.silu(res)
    return (y @ params["w_out"]).astype(x.dtype)


if __name__ == "__main__":
    key = jax.random.PRNGKey(0)
    batch, seq, d_model = 2, 8, 32
    expand, d_state, d_conv = 2, 16, 4
    d_inner = expand * d_model                # 64
    dt_rank = math.ceil(d_model / 16)         # 2

    keys = jax.random.split(key, 8)
    params = {
        "w_in": jax.random.normal(keys[0], (d_model, 2 * d_inner),
                                  jnp.float32) / math.sqrt(d_model),
        "conv_w": jax.random.normal(keys[1], (d_conv, d_inner),
                                    jnp.float32) / math.sqrt(d_conv),
        "conv_b": jax.random.normal(keys[2], (d_inner,), jnp.float32) * 0.1,
        "w_x": jax.random.normal(keys[3], (d_inner, dt_rank + 2 * d_state),
                                 jnp.float32) / math.sqrt(d_inner),
        "w_dt": jax.random.normal(keys[4], (dt_rank, d_inner),
                                  jnp.float32) / math.sqrt(dt_rank),
        "b_dt": jax.random.normal(keys[5], (d_inner,), jnp.float32) * 0.1,
        # A_log[d, i] = log(i+1)  (stored transposed: (n, d_inner))
        "a_log_t": jnp.broadcast_to(
            jnp.log(jnp.arange(1, d_state + 1, dtype=jnp.float32))[:, None],
            (d_state, d_inner)),
        "D": jnp.ones((d_inner,), jnp.float32),
        "w_out": jax.random.normal(keys[6], (d_inner, d_model),
                                   jnp.float32) / math.sqrt(d_inner),
    }
    x = jax.random.normal(keys[7], (batch, seq, d_model), jnp.float32)

    out = mamba_block(x, params, d_inner=d_inner, dt_rank=dt_rank,
                      d_state=d_state, d_conv=d_conv)
    out = jax.block_until_ready(out)

    ref = mamba_block_ref(x, params, d_inner=d_inner, dt_rank=dt_rank,
                          d_state=d_state, d_conv=d_conv)
    assert out.shape == (batch, seq, d_model)
    assert jnp.allclose(out, ref, atol=2e-3, rtol=2e-3), (
        "max abs diff = %g" % float(jnp.max(jnp.abs(out - ref))))

    print("KERNEL_OK")
</pallas_src>

<mosaic_0001>
module attributes {stable_mosaic.version = 11 : i64} {
  func.func @_mamba_block_kernel(%arg0: i32, %arg1: memref<1x8x32xf32, #tpu.memory_space<vmem>>, %arg2: memref<32x128xf32, #tpu.memory_space<vmem>>, %arg3: memref<4x64xf32, #tpu.memory_space<vmem>>, %arg4: memref<1x64xf32, #tpu.memory_space<vmem>>, %arg5: memref<64x34xf32, #tpu.memory_space<vmem>>, %arg6: memref<2x64xf32, #tpu.memory_space<vmem>>, %arg7: memref<1x64xf32, #tpu.memory_space<vmem>>, %arg8: memref<16x64xf32, #tpu.memory_space<vmem>>, %arg9: memref<1x64xf32, #tpu.memory_space<vmem>>, %arg10: memref<64x32xf32, #tpu.memory_space<vmem>>, %arg11: memref<1x8x32xf32, #tpu.memory_space<vmem>>) attributes {dimension_semantics = [#tpu.dimension_semantics<parallel>], iteration_bounds = array<i64: 2>, scalar_prefetch = 0 : i64, scratch_operands = 0 : i64, tpu.core_type = #tpu.core_type<tc>, window_params = [{transform_indices = @transform_0, window_bounds = array<i64: 1, 8, 32>}, {pipeline_mode = #tpu.pipeline_mode<synchronous>, transform_indices = @transform_1, window_bounds = array<i64: 32, 128>}, {pipeline_mode = #tpu.pipeline_mode<synchronous>, transform_indices = @transform_2, window_bounds = array<i64: 4, 64>}, {pipeline_mode = #tpu.pipeline_mode<synchronous>, transform_indices = @transform_3, window_bounds = array<i64: 1, 64>}, {pipeline_mode = #tpu.pipeline_mode<synchronous>, transform_indices = @transform_4, window_bounds = array<i64: 64, 34>}, {pipeline_mode = #tpu.pipeline_mode<synchronous>, transform_indices = @transform_5, window_bounds = array<i64: 2, 64>}, {pipeline_mode = #tpu.pipeline_mode<synchronous>, transform_indices = @transform_6, window_bounds = array<i64: 1, 64>}, {pipeline_mode = #tpu.pipeline_mode<synchronous>, transform_indices = @transform_7, window_bounds = array<i64: 16, 64>}, {pipeline_mode = #tpu.pipeline_mode<synchronous>, transform_indices = @transform_8, window_bounds = array<i64: 1, 64>}, {pipeline_mode = #tpu.pipeline_mode<synchronous>, transform_indices = @transform_9, window_bounds = array<i64: 64, 32>}, {transform_indices = @transform_10, window_bounds = array<i64: 1, 8, 32>}]} {
    %c0 = arith.constant 0 : index
    %c0_0 = arith.constant 0 : index
    %c0_1 = arith.constant 0 : index
    %0 = vector.load %arg1[%c0, %c0_0, %c0_1] : memref<1x8x32xf32, #tpu.memory_space<vmem>>, vector<1x8x32xf32>
    %1 = vector.shape_cast %0 : vector<1x8x32xf32> to vector<8x32xf32>
    %c0_2 = arith.constant 0 : index
    %c0_3 = arith.constant 0 : index
    %2 = vector.load %arg2[%c0_2, %c0_3] : memref<32x128xf32, #tpu.memory_space<vmem>>, vector<32x128xf32>
    %cst = arith.constant dense<0.000000e+00> : vector<8x128xf32>
    %3 = tpu.matmul %1, %2, %cst {dimension_numbers = #tpu.dot_dimension_numbers<[1], [0], [0], [1], [0, 0, 1, 1], [], []>, precision = #tpu.contract_precision<fp32>} : vector<8x32xf32>, vector<32x128xf32>, vector<8x128xf32> -> vector<8x128xf32>
    %4 = vector.extract_strided_slice %3 {offsets = [0, 0], sizes = [8, 64], strides = [1, 1]} : vector<8x128xf32> to vector<8x64xf32>
    %5 = vector.extract_strided_slice %3 {offsets = [0, 64], sizes = [8, 64], strides = [1, 1]} : vector<8x128xf32> to vector<8x64xf32>
    %c0_4 = arith.constant 0 : index
    %c0_5 = arith.constant 0 : index
    %6 = vector.load %arg3[%c0_4, %c0_5] : memref<4x64xf32, #tpu.memory_space<vmem>>, vector<4x64xf32>
    %c0_6 = arith.constant 0 : index
    %c0_7 = arith.constant 0 : index
    %7 = vector.load %arg4[%c0_6, %c0_7] : memref<1x64xf32, #tpu.memory_space<vmem>>, vector<1x64xf32>
    %cst_8 = arith.constant 0.000000e+00 : f32
    %8 = vector.broadcast %cst_8 : f32 to vector<3x64xf32>
    %9 = tpu.concatenate %8, %4 in 0 : vector<3x64xf32>, vector<8x64xf32> -> vector<11x64xf32>
    %cst_9 = arith.constant 0.000000e+00 : f32
    %10 = vector.broadcast %cst_9 : f32 to vector<8x64xf32>
    %11 = vector.broadcast %7 : vector<1x64xf32> to vector<8x64xf32>
    %12 = arith.addf %10, %11 : vector<8x64xf32>
    %13 = vector.extract_strided_slice %9 {offsets = [0, 0], sizes = [8, 64], strides = [1, 1]} : vector<11x64xf32> to vector<8x64xf32>
    %14 = vector.extract_strided_slice %6 {offsets = [0, 0], sizes = [1, 64], strides = [1, 1]} : vector<4x64xf32> to vector<1x64xf32>
    %15 = vector.broadcast %14 : vector<1x64xf32> to vector<8x64xf32>
    %16 = arith.mulf %13, %15 : vector<8x64xf32>
    %17 = arith.addf %12, %16 : vector<8x64xf32>
    %18 = vector.extract_strided_slice %9 {offsets = [1, 0], sizes = [8, 64], strides = [1, 1]} : vector<11x64xf32> to vector<8x64xf32>
    %19 = vector.extract_strided_slice %6 {offsets = [1, 0], sizes = [1, 64], strides = [1, 1]} : vector<4x64xf32> to vector<1x64xf32>
    %20 = vector.broadcast %19 : vector<1x64xf32> to vector<8x64xf32>
    %21 = arith.mulf %18, %20 : vector<8x64xf32>
    %22 = arith.addf %17, %21 : vector<8x64xf32>
    %23 = vector.extract_strided_slice %9 {offsets = [2, 0], sizes = [8, 64], strides = [1, 1]} : vector<11x64xf32> to vector<8x64xf32>
    %24 = vector.extract_strided_slice %6 {offsets = [2, 0], sizes = [1, 64], strides = [1, 1]} : vector<4x64xf32> to vector<1x64xf32>
    %25 = vector.broadcast %24 : vector<1x64xf32> to vector<8x64xf32>
    %26 = arith.mulf %23, %25 : vector<8x64xf32>
    %27 = arith.addf %22, %26 : vector<8x64xf32>
    %28 = vector.extract_strided_slice %9 {offsets = [3, 0], sizes = [8, 64], strides = [1, 1]} : vector<11x64xf32> to vector<8x64xf32>
    %29 = vector.extract_strided_slice %6 {offsets = [3, 0], sizes = [1, 64], strides = [1, 1]} : vector<4x64xf32> to vector<1x64xf32>
    %30 = vector.broadcast %29 : vector<1x64xf32> to vector<8x64xf32>
    %31 = arith.mulf %28, %30 : vector<8x64xf32>
    %32 = arith.addf %27, %31 : vector<8x64xf32>
    %cst_10 = arith.constant 0.000000e+00 : f32
    %33 = vector.broadcast %cst_10 : f32 to vector<8x64xf32>
    %34 = arith.subf %33, %32 : vector<8x64xf32>
    %35 = math.exp %34 : vector<8x64xf32>
    %cst_11 = arith.constant 1.000000e+00 : f32
    %36 = vector.broadcast %cst_11 : f32 to vector<8x64xf32>
    %37 = arith.addf %36, %35 : vector<8x64xf32>
    %cst_12 = arith.constant 1.000000e+00 : f32
    %38 = vector.broadcast %cst_12 : f32 to vector<8x64xf32>
    %39 = arith.divf %38, %37 : vector<8x64xf32>
    %40 = arith.mulf %32, %39 : vector<8x64xf32>
    %c0_13 = arith.constant 0 : index
    %c0_14 = arith.constant 0 : index
    %41 = vector.load %arg5[%c0_13, %c0_14] : memref<64x34xf32, #tpu.memory_space<vmem>>, vector<64x34xf32>
    %cst_15 = arith.constant dense<0.000000e+00> : vector<8x34xf32>
    %42 = tpu.matmul %40, %41, %cst_15 {dimension_numbers = #tpu.dot_dimension_numbers<[1], [0], [0], [1], [0, 0, 1, 1], [], []>, precision = #tpu.contract_precision<fp32>} : vector<8x64xf32>, vector<64x34xf32>, vector<8x34xf32> -> vector<8x34xf32>
    %43 = vector.extract_strided_slice %42 {offsets = [0, 0], sizes = [8, 2], strides = [1, 1]} : vector<8x34xf32> to vector<8x2xf32>
    %44 = vector.extract_strided_slice %42 {offsets = [0, 2], sizes = [8, 16], strides = [1, 1]} : vector<8x34xf32> to vector<8x16xf32>
    %45 = vector.extract_strided_slice %42 {offsets = [0, 18], sizes = [8, 16], strides = [1, 1]} : vector<8x34xf32> to vector<8x16xf32>
    %c0_16 = arith.constant 0 : index
    %c0_17 = arith.constant 0 : index
    %46 = vector.load %arg6[%c0_16, %c0_17] : memref<2x64xf32, #tpu.memory_space<vmem>>, vector<2x64xf32>
    %cst_18 = arith.constant 0.000000e+00 : f32
    %47 = vector.broadcast %cst_18 : f32 to vector<8x64xf32>
    %c0_19 = arith.constant 0 : index
    %c0_20 = arith.constant 0 : index
    %48 = vector.load %arg7[%c0_19, %c0_20] : memref<1x64xf32, #tpu.memory_space<vmem>>, vector<1x64xf32>
    %49 = vector.broadcast %48 : vector<1x64xf32> to vector<8x64xf32>
    %50 = arith.addf %47, %49 : vector<8x64xf32>
    %51 = vector.extract_strided_slice %43 {offsets = [0, 0], sizes = [8, 1], strides = [1, 1]} : vector<8x2xf32> to vector<8x1xf32>
    %52 = vector.extract_strided_slice %46 {offsets = [0, 0], sizes = [1, 64], strides = [1, 1]} : vector<2x64xf32> to vector<1x64xf32>
    %53 = vector.broadcast %51 : vector<8x1xf32> to vector<8x64xf32>
    %54 = vector.broadcast %52 : vector<1x64xf32> to vector<8x64xf32>
    %55 = arith.mulf %53, %54 : vector<8x64xf32>
    %56 = arith.addf %50, %55 : vector<8x64xf32>
    %57 = vector.extract_strided_slice %43 {offsets = [0, 1], sizes = [8, 1], strides = [1, 1]} : vector<8x2xf32> to vector<8x1xf32>
    %58 = vector.extract_strided_slice %46 {offsets = [1, 0], sizes = [1, 64], strides = [1, 1]} : vector<2x64xf32> to vector<1x64xf32>
    %59 = vector.broadcast %57 : vector<8x1xf32> to vector<8x64xf32>
    %60 = vector.broadcast %58 : vector<1x64xf32> to vector<8x64xf32>
    %61 = arith.mulf %59, %60 : vector<8x64xf32>
    %62 = arith.addf %56, %61 : vector<8x64xf32>
    %cst_21 = arith.constant 0.000000e+00 : f32
    %63 = vector.broadcast %cst_21 : f32 to vector<8x64xf32>
    %64 = arith.maximumf %62, %63 : vector<8x64xf32>
    %65 = math.absf %62 : vector<8x64xf32>
    %cst_22 = arith.constant 0.000000e+00 : f32
    %66 = vector.broadcast %cst_22 : f32 to vector<8x64xf32>
    %67 = arith.subf %66, %65 : vector<8x64xf32>
    %68 = math.exp %67 : vector<8x64xf32>
    %cst_23 = arith.constant 1.000000e+00 : f32
    %69 = vector.broadcast %cst_23 : f32 to vector<8x64xf32>
    %70 = arith.addf %69, %68 : vector<8x64xf32>
    %71 = math.log %70 : vector<8x64xf32>
    %72 = arith.addf %64, %71 : vector<8x64xf32>
    %c0_24 = arith.constant 0 : index
    %c0_25 = arith.constant 0 : index
    %73 = vector.load %arg8[%c0_24, %c0_25] : memref<16x64xf32, #tpu.memory_space<vmem>>, vector<16x64xf32>
    %74 = math.exp %73 : vector<16x64xf32>
    %cst_26 = arith.constant 0.000000e+00 : f32
    %75 = vector.broadcast %cst_26 : f32 to vector<16x64xf32>
    %76 = arith.subf %75, %74 : vector<16x64xf32>
    %77 = arith.mulf %72, %40 : vector<8x64xf32>
    %78 = tpu.transpose %44, [1, 0] : vector<8x16xf32> -> vector<16x8xf32>
    %cst_27 = arith.constant 0.000000e+00 : f32
    %79 = vector.broadcast %cst_27 : f32 to vector<16x64xf32>
    %80 = vector.extract_strided_slice %72 {offsets = [0, 0], sizes = [1, 64], strides = [1, 1]} : vector<8x64xf32> to vector<1x64xf32>
    %81 = vector.broadcast %80 : vector<1x64xf32> to vector<16x64xf32>
    %82 = arith.mulf %81, %76 : vector<16x64xf32>
    %83 = math.exp %82 : vector<16x64xf32>
    %84 = vector.extract_strided_slice %78 {offsets = [0, 0], sizes = [16, 1], strides = [1, 1]} : vector<16x8xf32> to vector<16x1xf32>
    %85 = vector.extract_strided_slice %77 {offsets = [0, 0], sizes = [1, 64], strides = [1, 1]} : vector<8x64xf32> to vector<1x64xf32>
    %86 = vector.broadcast %84 : vector<16x1xf32> to vector<16x64xf32>
    %87 = vector.broadcast %85 : vector<1x64xf32> to vector<16x64xf32>
    %88 = arith.mulf %86, %87 : vector<16x64xf32>
    %89 = arith.mulf %83, %79 : vector<16x64xf32>
    %90 = arith.addf %89, %88 : vector<16x64xf32>
    %91 = vector.extract_strided_slice %45 {offsets = [0, 0], sizes = [1, 16], strides = [1, 1]} : vector<8x16xf32> to vector<1x16xf32>
    %cst_28 = arith.constant dense<0.000000e+00> : vector<1x64xf32>
    %92 = tpu.matmul %91, %90, %cst_28 {dimension_numbers = #tpu.dot_dimension_numbers<[1], [0], [0], [1], [0, 0, 1, 1], [], []>, precision = #tpu.contract_precision<fp32>} : vector<1x16xf32>, vector<16x64xf32>, vector<1x64xf32> -> vector<1x64xf32>
    %93 = vector.extract_strided_slice %72 {offsets = [1, 0], sizes = [1, 64], strides = [1, 1]} : vector<8x64xf32> to vector<1x64xf32>
    %94 = vector.broadcast %93 : vector<1x64xf32> to vector<16x64xf32>
    %95 = arith.mulf %94, %76 : vector<16x64xf32>
    %96 = math.exp %95 : vector<16x64xf32>
    %97 = vector.extract_strided_slice %78 {offsets = [0, 1], sizes = [16, 1], strides = [1, 1]} : vector<16x8xf32> to vector<16x1xf32>
    %98 = vector.extract_strided_slice %77 {offsets = [1, 0], sizes = [1, 64], strides = [1, 1]} : vector<8x64xf32> to vector<1x64xf32>
    %99 = vector.broadcast %97 : vector<16x1xf32> to vector<16x64xf32>
    %100 = vector.broadcast %98 : vector<1x64xf32> to vector<16x64xf32>
    %101 = arith.mulf %99, %100 : vector<16x64xf32>
    %102 = arith.mulf %96, %90 : vector<16x64xf32>
    %103 = arith.addf %102, %101 : vector<16x64xf32>
    %104 = vector.extract_strided_slice %45 {offsets = [1, 0], sizes = [1, 16], strides = [1, 1]} : vector<8x16xf32> to vector<1x16xf32>
    %cst_29 = arith.constant dense<0.000000e+00> : vector<1x64xf32>
    %105 = tpu.matmul %104, %103, %cst_29 {dimension_numbers = #tpu.dot_dimension_numbers<[1], [0], [0], [1], [0, 0, 1, 1], [], []>, precision = #tpu.contract_precision<fp32>} : vector<1x16xf32>, vector<16x64xf32>, vector<1x64xf32> -> vector<1x64xf32>
    %106 = vector.extract_strided_slice %72 {offsets = [2, 0], sizes = [1, 64], strides = [1, 1]} : vector<8x64xf32> to vector<1x64xf32>
    %107 = vector.broadcast %106 : vector<1x64xf32> to vector<16x64xf32>
    %108 = arith.mulf %107, %76 : vector<16x64xf32>
    %109 = math.exp %108 : vector<16x64xf32>
    %110 = vector.extract_strided_slice %78 {offsets = [0, 2], sizes = [16, 1], strides = [1, 1]} : vector<16x8xf32> to vector<16x1xf32>
    %111 = vector.extract_strided_slice %77 {offsets = [2, 0], sizes = [1, 64], strides = [1, 1]} : vector<8x64xf32> to vector<1x64xf32>
    %112 = vector.broadcast %110 : vector<16x1xf32> to vector<16x64xf32>
    %113 = vector.broadcast %111 : vector<1x64xf32> to vector<16x64xf32>
    %114 = arith.mulf %112, %113 : vector<16x64xf32>
    %115 = arith.mulf %109, %103 : vector<16x64xf32>
    %116 = arith.addf %115, %114 : vector<16x64xf32>
    %117 = vector.extract_strided_slice %45 {offsets = [2, 0], sizes = [1, 16], strides = [1, 1]} : vector<8x16xf32> to vector<1x16xf32>
    %cst_30 = arith.constant dense<0.000000e+00> : vector<1x64xf32>
    %118 = tpu.matmul %117, %116, %cst_30 {dimension_numbers = #tpu.dot_dimension_numbers<[1], [0], [0], [1], [0, 0, 1, 1], [], []>, precision = #tpu.contract_precision<fp32>} : vector<1x16xf32>, vector<16x64xf32>, vector<1x64xf32> -> vector<1x64xf32>
    %119 = vector.extract_strided_slice %72 {offsets = [3, 0], sizes = [1, 64], strides = [1, 1]} : vector<8x64xf32> to vector<1x64xf32>
    %120 = vector.broadcast %119 : vector<1x64xf32> to vector<16x64xf32>
    %121 = arith.mulf %120, %76 : vector<16x64xf32>
    %122 = math.exp %121 : vector<16x64xf32>
    %123 = vector.extract_strided_slice %78 {offsets = [0, 3], sizes = [16, 1], strides = [1, 1]} : vector<16x8xf32> to vector<16x1xf32>
    %124 = vector.extract_strided_slice %77 {offsets = [3, 0], sizes = [1, 64], strides = [1, 1]} : vector<8x64xf32> to vector<1x64xf32>
    %125 = vector.broadcast %123 : vector<16x1xf32> to vector<16x64xf32>
    %126 = vector.broadcast %124 : vector<1x64xf32> to vector<16x64xf32>
    %127 = arith.mulf %125, %126 : vector<16x64xf32>
    %128 = arith.mulf %122, %116 : vector<16x64xf32>
    %129 = arith.addf %128, %127 : vector<16x64xf32>
    %130 = vector.extract_strided_slice %45 {offsets = [3, 0], sizes = [1, 16], strides = [1, 1]} : vector<8x16xf32> to vector<1x16xf32>
    %cst_31 = arith.constant dense<0.000000e+00> : vector<1x64xf32>
    %131 = tpu.matmul %130, %129, %cst_31 {dimension_numbers = #tpu.dot_dimension_numbers<[1], [0], [0], [1], [0, 0, 1, 1], [], []>, precision = #tpu.contract_precision<fp32>} : vector<1x16xf32>, vector<16x64xf32>, vector<1x64xf32> -> vector<1x64xf32>
    %132 = vector.extract_strided_slice %72 {offsets = [4, 0], sizes = [1, 64], strides = [1, 1]} : vector<8x64xf32> to vector<1x64xf32>
    %133 = vector.broadcast %132 : vector<1x64xf32> to vector<16x64xf32>
    %134 = arith.mulf %133, %76 : vector<16x64xf32>
    %135 = math.exp %134 : vector<16x64xf32>
    %136 = vector.extract_strided_slice %78 {offsets = [0, 4], sizes = [16, 1], strides = [1, 1]} : vector<16x8xf32> to vector<16x1xf32>
    %137 = vector.extract_strided_slice %77 {offsets = [4, 0], sizes = [1, 64], strides = [1, 1]} : vector<8x64xf32> to vector<1x64xf32>
    %138 = vector.broadcast %136 : vector<16x1xf32> to vector<16x64xf32>
    %139 = vector.broadcast %137 : vector<1x64xf32> to vector<16x64xf32>
    %140 = arith.mulf %138, %139 : vector<16x64xf32>
    %141 = arith.mulf %135, %129 : vector<16x64xf32>
    %142 = arith.addf %141, %140 : vector<16x64xf32>
    %143 = vector.extract_strided_slice %45 {offsets = [4, 0], sizes = [1, 16], strides = [1, 1]} : vector<8x16xf32> to vector<1x16xf32>
    %cst_32 = arith.constant dense<0.000000e+00> : vector<1x64xf32>
    %144 = tpu.matmul %143, %142, %cst_32 {dimension_numbers = #tpu.dot_dimension_numbers<[1], [0], [0], [1], [0, 0, 1, 1], [], []>, precision = #tpu.contract_precision<fp32>} : vector<1x16xf32>, vector<16x64xf32>, vector<1x64xf32> -> vector<1x64xf32>
    %145 = vector.extract_strided_slice %72 {offsets = [5, 0], sizes = [1, 64], strides = [1, 1]} : vector<8x64xf32> to vector<1x64xf32>
    %146 = vector.broadcast %145 : vector<1x64xf32> to vector<16x64xf32>
    %147 = arith.mulf %146, %76 : vector<16x64xf32>
    %148 = math.exp %147 : vector<16x64xf32>
    %149 = vector.extract_strided_slice %78 {offsets = [0, 5], sizes = [16, 1], strides = [1, 1]} : vector<16x8xf32> to vector<16x1xf32>
    %150 = vector.extract_strided_slice %77 {offsets = [5, 0], sizes = [1, 64], strides = [1, 1]} : vector<8x64xf32> to vector<1x64xf32>
    %151 = vector.broadcast %149 : vector<16x1xf32> to vector<16x64xf32>
    %152 = vector.broadcast %150 : vector<1x64xf32> to vector<16x64xf32>
    %153 = arith.mulf %151, %152 : vector<16x64xf32>
    %154 = arith.mulf %148, %142 : vector<16x64xf32>
    %155 = arith.addf %154, %153 : vector<16x64xf32>
    %156 = vector.extract_strided_slice %45 {offsets = [5, 0], sizes = [1, 16], strides = [1, 1]} : vector<8x16xf32> to vector<1x16xf32>
    %cst_33 = arith.constant dense<0.000000e+00> : vector<1x64xf32>
    %157 = tpu.matmul %156, %155, %cst_33 {dimension_numbers = #tpu.dot_dimension_numbers<[1], [0], [0], [1], [0, 0, 1, 1], [], []>, precision = #tpu.contract_precision<fp32>} : vector<1x16xf32>, vector<16x64xf32>, vector<1x64xf32> -> vector<1x64xf32>
    %158 = vector.extract_strided_slice %72 {offsets = [6, 0], sizes = [1, 64], strides = [1, 1]} : vector<8x64xf32> to vector<1x64xf32>
    %159 = vector.broadcast %158 : vector<1x64xf32> to vector<16x64xf32>
    %160 = arith.mulf %159, %76 : vector<16x64xf32>
    %161 = math.exp %160 : vector<16x64xf32>
    %162 = vector.extract_strided_slice %78 {offsets = [0, 6], sizes = [16, 1], strides = [1, 1]} : vector<16x8xf32> to vector<16x1xf32>
    %163 = vector.extract_strided_slice %77 {offsets = [6, 0], sizes = [1, 64], strides = [1, 1]} : vector<8x64xf32> to vector<1x64xf32>
    %164 = vector.broadcast %162 : vector<16x1xf32> to vector<16x64xf32>
    %165 = vector.broadcast %163 : vector<1x64xf32> to vector<16x64xf32>
    %166 = arith.mulf %164, %165 : vector<16x64xf32>
    %167 = arith.mulf %161, %155 : vector<16x64xf32>
    %168 = arith.addf %167, %166 : vector<16x64xf32>
    %169 = vector.extract_strided_slice %45 {offsets = [6, 0], sizes = [1, 16], strides = [1, 1]} : vector<8x16xf32> to vector<1x16xf32>
    %cst_34 = arith.constant dense<0.000000e+00> : vector<1x64xf32>
    %170 = tpu.matmul %169, %168, %cst_34 {dimension_numbers = #tpu.dot_dimension_numbers<[1], [0], [0], [1], [0, 0, 1, 1], [], []>, precision = #tpu.contract_precision<fp32>} : vector<1x16xf32>, vector<16x64xf32>, vector<1x64xf32> -> vector<1x64xf32>
    %171 = vector.extract_strided_slice %72 {offsets = [7, 0], sizes = [1, 64], strides = [1, 1]} : vector<8x64xf32> to vector<1x64xf32>
    %172 = vector.broadcast %171 : vector<1x64xf32> to vector<16x64xf32>
    %173 = arith.mulf %172, %76 : vector<16x64xf32>
    %174 = math.exp %173 : vector<16x64xf32>
    %175 = vector.extract_strided_slice %78 {offsets = [0, 7], sizes = [16, 1], strides = [1, 1]} : vector<16x8xf32> to vector<16x1xf32>
    %176 = vector.extract_strided_slice %77 {offsets = [7, 0], sizes = [1, 64], strides = [1, 1]} : vector<8x64xf32> to vector<1x64xf32>
    %177 = vector.broadcast %175 : vector<16x1xf32> to vector<16x64xf32>
    %178 = vector.broadcast %176 : vector<1x64xf32> to vector<16x64xf32>
    %179 = arith.mulf %177, %178 : vector<16x64xf32>
    %180 = arith.mulf %174, %168 : vector<16x64xf32>
    %181 = arith.addf %180, %179 : vector<16x64xf32>
    %182 = vector.extract_strided_slice %45 {offsets = [7, 0], sizes = [1, 16], strides = [1, 1]} : vector<8x16xf32> to vector<1x16xf32>
    %cst_35 = arith.constant dense<0.000000e+00> : vector<1x64xf32>
    %183 = tpu.matmul %182, %181, %cst_35 {dimension_numbers = #tpu.dot_dimension_numbers<[1], [0], [0], [1], [0, 0, 1, 1], [], []>, precision = #tpu.contract_precision<fp32>} : vector<1x16xf32>, vector<16x64xf32>, vector<1x64xf32> -> vector<1x64xf32>
    %184 = tpu.concatenate %92, %105, %118, %131, %144, %157, %170, %183 in 0 : vector<1x64xf32>, vector<1x64xf32>, vector<1x64xf32>, vector<1x64xf32>, vector<1x64xf32>, vector<1x64xf32>, vector<1x64xf32>, vector<1x64xf32> -> vector<8x64xf32>
    %c0_36 = arith.constant 0 : index
    %c0_37 = arith.constant 0 : index
    %185 = vector.load %arg9[%c0_36, %c0_37] : memref<1x64xf32, #tpu.memory_space<vmem>>, vector<1x64xf32>
    %186 = vector.broadcast %185 : vector<1x64xf32> to vector<8x64xf32>
    %187 = arith.mulf %40, %186 : vector<8x64xf32>
    %188 = arith.addf %184, %187 : vector<8x64xf32>
    %cst_38 = arith.constant 0.000000e+00 : f32
    %189 = vector.broadcast %cst_38 : f32 to vector<8x64xf32>
    %190 = arith.subf %189, %5 : vector<8x64xf32>
    %191 = math.exp %190 : vector<8x64xf32>
    %cst_39 = arith.constant 1.000000e+00 : f32
    %192 = vector.broadcast %cst_39 : f32 to vector<8x64xf32>
    %193 = arith.addf %192, %191 : vector<8x64xf32>
    %cst_40 = arith.constant 1.000000e+00 : f32
    %194 = vector.broadcast %cst_40 : f32 to vector<8x64xf32>
    %195 = arith.divf %194, %193 : vector<8x64xf32>
    %196 = arith.mulf %5, %195 : vector<8x64xf32>
    %197 = arith.mulf %188, %196 : vector<8x64xf32>
    %c0_41 = arith.constant 0 : index
    %c0_42 = arith.constant 0 : index
    %198 = vector.load %arg10[%c0_41, %c0_42] : memref<64x32xf32, #tpu.memory_space<vmem>>, vector<64x32xf32>
    %cst_43 = arith.constant dense<0.000000e+00> : vector<8x32xf32>
    %199 = tpu.matmul %197, %198, %cst_43 {dimension_numbers = #tpu.dot_dimension_numbers<[1], [0], [0], [1], [0, 0, 1, 1], [], []>, precision = #tpu.contract_precision<fp32>} : vector<8x64xf32>, vector<64x32xf32>, vector<8x32xf32> -> vector<8x32xf32>
    %c0_44 = arith.constant 0 : index
    %c0_45 = arith.constant 0 : index
    %c0_46 = arith.constant 0 : index
    %200 = vector.load %arg11[%c0_44, %c0_45, %c0_46] : memref<1x8x32xf32, #tpu.memory_space<vmem>>, vector<1x8x32xf32>
    %201 = vector.shape_cast %200 : vector<1x8x32xf32> to vector<8x32xf32>
    %202 = vector.shape_cast %199 : vector<8x32xf32> to vector<1x8x32xf32>
    tpu.vector_store %arg11[%c0_44, %c0_45, %c0_46], %202 {strides = array<i32>} : memref<1x8x32xf32, #tpu.memory_space<vmem>>, vector<1x8x32xf32>,
    return
  }
  func.func @transform_0(%arg0: i32) -> (i32, i32, i32) {
    %c0_i32 = arith.constant 0 : i32
    %c0_i32_0 = arith.constant 0 : i32
    %c0_i32_1 = arith.constant 0 : i32
    return %arg0, %c0_i32, %c0_i32_0 : i32, i32, i32
  }
  func.func @transform_1(%arg0: i32) -> (i32, i32) {
    %c0_i32 = arith.constant 0 : i32
    %c0_i32_0 = arith.constant 0 : i32
    %c0_i32_1 = arith.constant 0 : i32
    return %c0_i32, %c0_i32_0 : i32, i32
  }
  func.func @transform_2(%arg0: i32) -> (i32, i32) {
    %c0_i32 = arith.constant 0 : i32
    %c0_i32_0 = arith.constant 0 : i32
    %c0_i32_1 = arith.constant 0 : i32
    return %c0_i32, %c0_i32_0 : i32, i32
  }
  func.func @transform_3(%arg0: i32) -> (i32, i32) {
    %c0_i32 = arith.constant 0 : i32
    %c0_i32_0 = arith.constant 0 : i32
    %c0_i32_1 = arith.constant 0 : i32
    return %c0_i32, %c0_i32_0 : i32, i32
  }
  func.func @transform_4(%arg0: i32) -> (i32, i32) {
    %c0_i32 = arith.constant 0 : i32
    %c0_i32_0 = arith.constant 0 : i32
    %c0_i32_1 = arith.constant 0 : i32
    return %c0_i32, %c0_i32_0 : i32, i32
  }
  func.func @transform_5(%arg0: i32) -> (i32, i32) {
    %c0_i32 = arith.constant 0 : i32
    %c0_i32_0 = arith.constant 0 : i32
    %c0_i32_1 = arith.constant 0 : i32
    return %c0_i32, %c0_i32_0 : i32, i32
  }
  func.func @transform_6(%arg0: i32) -> (i32, i32) {
    %c0_i32 = arith.constant 0 : i32
    %c0_i32_0 = arith.constant 0 : i32
    %c0_i32_1 = arith.constant 0 : i32
    return %c0_i32, %c0_i32_0 : i32, i32
  }
  func.func @transform_7(%arg0: i32) -> (i32, i32) {
    %c0_i32 = arith.constant 0 : i32
    %c0_i32_0 = arith.constant 0 : i32
    %c0_i32_1 = arith.constant 0 : i32
    return %c0_i32, %c0_i32_0 : i32, i32
  }
  func.func @transform_8(%arg0: i32) -> (i32, i32) {
    %c0_i32 = arith.constant 0 : i32
    %c0_i32_0 = arith.constant 0 : i32
    %c0_i32_1 = arith.constant 0 : i32
    return %c0_i32, %c0_i32_0 : i32, i32
  }
  func.func @transform_9(%arg0: i32) -> (i32, i32) {
    %c0_i32 = arith.constant 0 : i32
    %c0_i32_0 = arith.constant 0 : i32
    %c0_i32_1 = arith.constant 0 : i32
    return %c0_i32, %c0_i32_0 : i32, i32
  }
  func.func @transform_10(%arg0: i32) -> (i32, i32, i32) {
    %c0_i32 = arith.constant 0 : i32
    %c0_i32_0 = arith.constant 0 : i32
    %c0_i32_1 = arith.constant 0 : i32
    return %arg0, %c0_i32, %c0_i32_0 : i32, i32, i32
  }
}

</mosaic_0001>

<bundles_post_ra>
// kernel: tpu_custom_call.1
= control target key start
LH: loop header
LB: loop body
LE: loop exit
PB: predicated region body
PF: predicated region fallthrough
CT: control target
= control target key end

     0   :  { %15 = vsyncpa [#allocation3], 0  ;;  %s3854_s0 = inlined_call_operand.vmem [shape: f32[2,8,32], index: 0, kind: input, shape index: {}]   ;;  %s3855_s1 = inlined_call_operand.vmem [shape: f32[32,128], index: 1, kind: input, shape index: {}]   ;;  %s3856_s2 = inlined_call_operand.vmem [shape: f32[4,64], index: 2, kind: input, shape index: {}]   ;;  %s3857_s3 = inlined_call_operand.vmem [shape: f32[1,64], index: 3, kind: input, shape index: {}]   ;;  %s3858_s4 = inlined_call_operand.vmem [shape: f32[64,34], index: 4, kind: input, shape index: {}]   ;;  %s3859_s5 = inlined_call_operand.vmem [shape: f32[2,64], index: 5, kind: input, shape index: {}]   ;;  %s3860_s6 = inlined_call_operand.vmem [shape: f32[1,64], index: 6, kind: input, shape index: {}]   ;;  %s3861_s7 = inlined_call_operand.vmem [shape: f32[16,64], index: 7, kind: input, shape index: {}]   ;;  %s3862_s8 = inlined_call_operand.vmem [shape: f32[1,64], index: 8, kind: input, shape index: {}]   ;;  %s3863_s9 = inlined_call_operand.vmem [shape: f32[64,32], index: 9, kind: input, shape index: {}]   ;;  %s3864_s10 = inlined_call_operand.hbm [shape: f32[2,8,32], index: 10, kind: output, shape index: {}]  }
   0x1   :  { %17 = vsyncpa [#allocation3 + $0x1], 0  ;;  %s3075_s13 = smov 0   ;;  %s3077_s14 = smov 0  }
   0x2   :  { %s3079_s15 = smov 0   ;;  %s3081_s16 = smov 0  }
   0x3 LB: > { %s3096_s17 = sadd.s32 4294967295, %s3007_s16   ;;  %s2815_s18 = sadd.s32 4294967294, %s3007_s16   ;;  %s3007_s16 = sphi %s3081_s16, %s3872_s16   ;;  %s3003_s15 = sphi %s3079_s15, %s3871_s15   ;;  %s2999_s14 = sphi %s3077_s14, %s3870_s14   ;;  %s2995_s13 = sphi %s3075_s13, %s3869_s13  }
   0x4   : > { %s3100_s19 = sadd.s32 1, %s3007_s16   ;;  %s245_s20 = sadd.s32 1, %s3003_s15 }
   0x5   : > { %s242_s21 = ssub.s32 %s3007_s16, %s3100_s19  ;;  %p255_p0 = scmp.ne.s32.totalorder %s3003_s15, %s2999_s14 }
   0x6   : > { %p243_p1 = scmp.eq.s32.totalorder %s242_s21, 0  ;;  %p256_p2 = scmp.eq.s32.totalorder %s3096_s17, 1 }
   0x7   : > { %p261_p3 = scmp.ne.s32.totalorder %s2999_s14, %s2995_s13  ;;  %p262_p4 = scmp.eq.s32.totalorder %s2815_s18, 1 }
   0x8   : > { %s3111_s22 = scalar_select %p243_p1, %s3003_s15, %s245_s20  }
   0x9   : > { %p3113_p5 = por %p256_p2, %p255_p0  ;;  %p3117_p6 = por %p262_p4, %p261_p3 }
   0xa   : > { %p2818_p7 = scmp.ge.s32.totalorder %s3007_s16, 1  ;;  %p314_p8 = scmp.lt.s32.totalorder %s3007_s16, 3 }
   0xc   : > { %p315_p9 = pnand %p2818_p7, %p314_p8 }
   0xd   : > { %p351_p10 = scmp.lt.s32.totalorder (!%p315_p9), %s3096_s17, 1  ;;  %s3011_s25 = smov (!%p315_p9), 110  }
   0xe   : > { %318 = sbr.rel (%p315_p9) target bundleno = 1180 (0x49c), region = 60  ;;  %s3019_s21 = smov (!%p315_p9), 64  }
   0xf   : > { %s348_s12 = sand.u32 (!%p315_p9), 1, %s2999_s14  }
  0x13   : > { %v359_v0 = vld [vmem:[%s3855_s1 + $0x18] sm:$0xff]  ;;  %v358_v1 = vld [vmem:[%s3855_s1 + $0x10] sm:$0xff]  ;;  %v357_v2 = vld [vmem:[%s3855_s1 + $0x8] sm:$0xff]  ;;  %s352_s18 = scalar_select %p351_p10, %s3096_s17, 1  ;;  %vm360_vm0 = vcmask 261120   ;;  %vm554_vm1 = vcmask 1042432  }
  0x14   : > { %v376_v3 = vand.u32 4294901760, %v359_v0  ;;  %v378_v4 = vand.u32 4294901760, %v358_v1  ;;  %v380_v5 = vand.u32 4294901760, %v357_v2  ;;  %v356_v6 = vld [vmem:[%s3855_s1] sm:$0xff]  ;;  %v623_v31 = vld [vmem:[%s3858_s4 + $0x38] sm:$0xff]  ;;  %v622_v32 = vld [vmem:[%s3858_s4 + $0x30] sm:$0xff] }
  0x15   : > { %v382_v7 = vand.u32 4294901760, %v356_v6  ;;  %s2820_s20 = sshll.u32 %s352_s18, 3  ;;  %v621_v33 = vld [vmem:[%s3858_s4 + $0x28] sm:$0xff]  ;;  %v3150_v34 = vand.u32 4294901760, %v623_v31  ;;  %v3152_v35 = vand.u32 4294901760, %v622_v32  ;;  %v620_v37 = vld [vmem:[%s3858_s4 + $0x20] sm:$0xff] }
  0x16   : > { %v406_v8 = vsub.f32 %v359_v0, %v376_v3  ;;  %v412_v9 = vsub.f32 %v358_v1, %v378_v4  ;;  %477 = vmatpush.msra.mxu3 %v376_v3  ;;  %377 = vmatpush.msra.mxu0 %v376_v3  ;;  %v418_v10 = vsub.f32 %v357_v2, %v380_v5  ;;  %s354_s26 = scalar_lea.vmem %s3854_s0, %s2820_s20  ;;  %v3154_v36 = vand.u32 4294901760, %v621_v33  ;;  %v619_v38 = vld [vmem:[%s3858_s4 + $0x18] sm:$0xff]  ;;  %v618_v39 = vld [vmem:[%s3858_s4 + $0x10] sm:$0xff]  ;;  %v617_v43 = vld [vmem:[%s3858_s4 + $0x8] sm:$0xff]  ;;  %s2819_s18 = sshll.u32 %s348_s12, 3 }
  0x17   : > { %v424_v11 = vsub.f32 %v356_v6, %v382_v7  ;;  %v355_v15 = vld [vmem:[%s354_s26] sm:$0xff]  ;;  %v3165_v40 = vand.u32 4294901760, %v620_v37  ;;  %v3167_v41 = vand.u32 4294901760, %v619_v38  ;;  %v3169_v42 = vand.u32 4294901760, %v618_v39  ;;  %s3012_s26 = smov 126   ;;  %s2822_s20 = sshll.u32 %s3096_s17, 3 }
  0x18   : > { %448 = vmatpush.msra.mxu2 %v406_v8  ;;  %v407_v12 = vand.u32 4294901760, %v406_v8  ;;  %479 = vmatpush.msra.mxu3 %v378_v4  ;;  %v413_v13 = vand.u32 4294901760, %v412_v9  ;;  %v419_v14 = vand.u32 4294901760, %v418_v10  ;;  %v362_v19 = vsel %vm360_vm0, %v355_v15, 0  ;;  %v616_v48 = vld [vmem:[%s3858_s4] sm:$0xff]  ;;  %s350_s27 = scalar_lea.vmem [#allocation2], %s2819_s18 }
  0x19   : > { %379 = vmatpush.msra.mxu0 %v378_v4  ;;  %v425_v16 = vand.u32 4294901760, %v424_v11  ;;  %v384_v21 = vand.u32 4294901760, %v362_v19  ;;  %v3175_v44 = vsub.f32 %v623_v31, %v3150_v34  ;;  %v3178_v45 = vsub.f32 %v622_v32, %v3152_v35  ;;  %s2753_s28 = sshll.u32 %s350_s27, 4  ;;  %s2741_s17 = scalar_lea.sflag [#allocation3], %s348_s12  ;;  %s2754_s28 = int_to_ptr.vmem [resolvable:$true] %s2753_s28 }
  0x1a   : > { %451 = vmatpush.msra.mxu2 %v412_v9  ;;  %v408_v17 = vsub.f32 %v406_v8, %v407_v12  ;;  %v414_v18 = vsub.f32 %v412_v9, %v413_v13  ;;  %481 = vmatpush.msra.mxu3 %v380_v5  ;;  %v420_v20 = vsub.f32 %v418_v10, %v419_v14  ;;  %v3185_v47 = vand.u32 4294901760, %v617_v43  ;;  %s2965_s18 = scalar_lea.hbm %s3864_s10, 16 }
  0x1b   : > { %381 = vmatpush.msra.mxu0 %v380_v5  ;;  %v426_v24 = vsub.f32 %v424_v11, %v425_v16  ;;  %v385_v25 = vsub.f32 %v362_v19, %v384_v21  ;;  %v3181_v46 = vsub.f32 %v621_v33, %v3154_v36  ;;  %v3191_v51 = vsub.f32 %v620_v37, %v3165_v40 }
  0x1c   : > { %v409_v22 = vand.u32 4294901760, %v408_v17  ;;  %454 = vmatpush.msra.mxu2 %v418_v10  ;;  %v415_v23 = vand.u32 4294901760, %v414_v18  ;;  %483 = vmatpush.msra.mxu3 %v382_v7  ;;  %v421_v26 = vand.u32 4294901760, %v420_v20  ;;  %v3194_v52 = vsub.f32 %v619_v38, %v3167_v41  ;;  %v549_v10 = vld [vmem:[%s3856_s2] sm:$0xf] }
  0x1d   : > { %383 = vmatpush.msra.mxu0 %v382_v7  ;;  %v386_v27 = vand.u32 4294901760, %v385_v25  ;;  %v427_v28 = vand.u32 4294901760, %v426_v24  ;;  %v3197_v53 = vsub.f32 %v618_v39, %v3169_v42  ;;  %v671_v56 = vand.u32 4294901760, %v3175_v44 }
  0x1e   : > { %410 = vmatpush.msra.mxu1 %v409_v22  ;;  %457 = vmatpush.msra.mxu2 %v424_v11  ;;  %v677_v57 = vand.u32 4294901760, %v3178_v45  ;;  %v683_v58 = vand.u32 4294901760, %v3181_v46  ;;  %v689_v59 = vand.u32 4294901760, %v3191_v51  ;;  %v695_v60 = vand.u32 4294901760, %v3194_v52 }
  0x1f   : > { %460 = vmatmul.f32.vlgmr.msra.gmra.mxu2 %v385_v25  ;;  %506 = vmatpush.msrb.mxu0 %v407_v12  ;;  %v387_v29 = vsub.f32 %v385_v25, %v386_v27  ;;  %v3207_v61 = vsub.f32 %v617_v43, %v3185_v47  ;;  %v3210_v62 = vand.u32 4294901760, %v616_v48  ;;  %v672_v0 = vsub.f32 %v3175_v44, %v671_v56 }
  0x20   : > { %416 = vmatpush.msra.mxu1 %v415_v23  ;;  %487 = vmatmul.f32.vlgmr.msra.gmra.mxu3 %v386_v27  ;;  %v678_v1 = vsub.f32 %v3178_v45, %v677_v57  ;;  %v684_v2 = vsub.f32 %v3181_v46, %v683_v58  ;;  %v690_v6 = vsub.f32 %v3191_v51, %v689_v59  ;;  %v563_v20 = vperm.slane %v549_v10, 1 }
  0x21   : > { %510 = vmatpush.msrb.mxu0 %v413_v13  ;;  %v388_v30 = vand.u32 4294901760, %v387_v29  ;;  %637 = vmatpush.msrb.mxu2 %v3150_v34  ;;  %v707_v8 = vand.u32 4294901760, %v3207_v61  ;;  %v696_v12 = vsub.f32 %v3194_v52, %v695_v60  ;;  %v3239_v13 = vsub.f32 %v616_v48, %v3210_v62 }
  0x22   : > { %422 = vmatpush.msra.mxu1 %v421_v26  ;;  %v685_v11 = vand.u32 4294901760, %v684_v2  ;;  %v691_v17 = vand.u32 4294901760, %v690_v6  ;;  %v574_v23 = vperm.slane %v549_v10, 2  ;;  %v585_v24 = vperm.slane %v549_v10, 3 }
  0x23   : > { %514 = vmatpush.msrb.mxu0 %v419_v14  ;;  %639 = vmatpush.msrb.mxu2 %v3152_v35  ;;  %v713_v19 = vand.u32 4294901760, %v3239_v13  ;;  %v697_v25 = vand.u32 4294901760, %v696_v12  ;;  %v560_v26 = vperm.slane %v549_v10, 0  ;;  %vm568_vm2 = vcmask 1046528  }
  0x24   : > { %428 = vmatpush.msra.mxu1 %v427_v28  ;;  %389 = vmatmul.f32.vlgmr.msra.gmra.mxu0 %v388_v30  ;;  %v2894_v30 = vld [vmem:[%s3857_s3] ss:$0 sm:$0xff]  ;;  %vm579_vm3 = vcmask 1045504   ;;  %vm590_vm4 = vcmask 1044480   ;;  %vm624_vm9 = vcmask 523264   ;;  %v3010_v12 = vmov 0  }
  0x25   : > { %430 = vmatmul.f32.vlgmr.msra.gmra.mxu1 %v384_v21  ;;  %518 = vmatpush.msrb.mxu0 %v425_v16  ;;  %v714_v29 = vsub.f32 %v3239_v13, %v713_v19  ;;  %vm965_vm10 = vcmask 130048   ;;  %vm2450_vm15 = vcmask 1040384  }
  0x26   : > { %537 = vmatpush.msrb.mxu1 %v376_v3  ;;  %641 = vmatpush.msrb.mxu2 %v3154_v36 }
  0x27   : > { %732 = vmatpush.msra.mxu0 %v3175_v44  ;;  %2876 = vset.pattern.permute.xlu0 %v3010_v12 }
  0x28   : > { %539 = vmatpush.msrb.mxu1 %v378_v4  ;;  %v673_v4 = vand.u32 4294901760, %v672_v0  ;;  %643 = vmatpush.msrb.mxu2 %v3165_v40 }
  0x29   : > { %735 = vmatpush.msra.mxu0 %v3178_v45  ;;  %2878 = vset.pattern.permute.xlu2 %v3010_v12 }
  0x2a   : > { %541 = vmatpush.msrb.mxu1 %v380_v5  ;;  %v679_v5 = vand.u32 4294901760, %v678_v1  ;;  %674 = vmatpush.msrb.mxu3 %v673_v4 }
  0x2b   : > { %738 = vmatpush.msra.mxu0 %v3181_v46  ;;  %645 = vmatpush.msrb.mxu2 %v3167_v41 }
  0x2c   : > { %543 = vmatpush.msrb.mxu1 %v382_v7  ;;  %520 = vmatmul.f32.vlgmr.msrb.gmra.mxu0 %v384_v21  ;;  %v701_v7 = vand.u32 4294901760, %v3197_v53 }
  0x2d   : > { %545 = vmatmul.f32.vlgmr.msrb.gmra.mxu1 %v384_v21  ;;  %741 = vmatpush.msra.mxu0 %v3191_v51  ;;  %v708_v21 = vsub.f32 %v3207_v61, %v707_v8 }
  0x2e   : > { %769 = vmatpush.msra.mxu1 %v3150_v34  ;;  %680 = vmatpush.msrb.mxu3 %v679_v5  ;;  %v702_v18 = vsub.f32 %v3197_v53, %v701_v7 }
  0x2f   : > { %744 = vmatpush.msra.mxu0 %v3194_v52  ;;  %647 = vmatpush.msrb.mxu2 %v3169_v42  ;;  %v709_v31 = vand.u32 4294901760, %v708_v21 }
  0x30   : > { %771 = vmatpush.msra.mxu1 %v3152_v35  ;;  %686 = vmatpush.msrb.mxu3 %v685_v11  ;;  %v703_v28 = vand.u32 4294901760, %v702_v18  ;;  %v3009_v11 = vmov 1  }
  0x31   : > { %747 = vmatpush.msra.mxu0 %v3197_v53  ;;  %649 = vmatpush.msrb.mxu2 %v3185_v47 }
  0x32   : > { %773 = vmatpush.msra.mxu1 %v3154_v36  ;;  %692 = vmatpush.msrb.mxu3 %v691_v17 }
  0x33   : > { %750 = vmatpush.msra.mxu0 %v3207_v61  ;;  %651 = vmatpush.msrb.mxu2 %v3210_v62 }
  0x34   : > { %775 = vmatpush.msra.mxu1 %v3165_v40  ;;  %698 = vmatpush.msrb.mxu3 %v697_v25 }
  0x35   : > { %753 = vmatpush.msra.mxu0 %v3239_v13  ;;  %802 = vmatpush.msra.mxu2 %v671_v56 }
  0x36   : > { %777 = vmatpush.msra.mxu1 %v3167_v41  ;;  %704 = vmatpush.msrb.mxu3 %v703_v28 }
  0x37   : > { %806 = vmatpush.msra.mxu2 %v677_v57  ;;  %2877 = vset.pattern.permute.xlu1 %v3009_v11 }
  0x38   : > { %779 = vmatpush.msra.mxu1 %v3169_v42  ;;  %710 = vmatpush.msrb.mxu3 %v709_v31 }
  0x39   : > { %810 = vmatpush.msra.mxu2 %v683_v58 }
  0x3a   : > { %781 = vmatpush.msra.mxu1 %v3185_v47 }
  0x3b   : > { %814 = vmatpush.msra.mxu2 %v689_v59 }
  0x3c   : > { %783 = vmatpush.msra.mxu1 %v3210_v62 }
  0x3d   : > { %818 = vmatpush.msra.mxu2 %v695_v60 }
  0x3f   : > { %822 = vmatpush.msra.mxu2 %v701_v7 }
  0x41   : > { %826 = vmatpush.msra.mxu2 %v707_v8 }
  0x43   : > { %830 = vmatpush.msra.mxu2 %v713_v19 }
  0xa1   : > { %v390_v49 = vpop.f32.mrf.mxu0 }
  0xa2   : > { %v431_v50 = vpop.f32.mrf.mxu1  ;;  %v461_v55 = vpop.f32.mrf.mxu2 }
  0xa3   : > { %v432_v54 = vadd.f32 %v431_v50, %v390_v49  ;;  %v488_v3 = vpop.f32.mrf.mxu3 }
  0xa5   : > { %v462_v63 = vadd.f32 %v461_v55, %v432_v54  ;;  %v715_v54 = vand.u32 4294901760, %v714_v29  ;;  %v2895_v29 = vld [vmem:[%s3860_s6] ss:$0 sm:$0xff] }
  0xa7   : > { %v489_v9 = vadd.f32 %v488_v3, %v462_v63  ;;  %716 = vmatpush.msrb.mxu3 %v715_v54  ;;  %v895_v54 = vld [vmem:[%s3861_s7] sm:$0xff] }
  0xa9   : > { %v521_v14 = vpop.f32.mrf.mxu0  ;;  %845 = vmatpush.msra.mxu3 %v3150_v34 }
  0xaa   : > { %v546_v15 = vpop.f32.mrf.mxu1  ;;  %v522_v16 = vadd.f32 %v521_v14, %v489_v9 }
  0xab   : > { %847 = vmatpush.msra.mxu3 %v3152_v35 }
  0xac   : > { %v3254_v22 = vadd.f32 %v546_v15, %v522_v16 }
  0xad   : > { %849 = vmatpush.msra.mxu3 %v3154_v36 }
  0xae   : > { %v552_v27 = vrot.slane %v3254_v22, 5 }
  0xaf   : > { %851 = vmatpush.msra.mxu3 %v3165_v40 }
  0xb0   : > { %v555_v32 = vsel %vm554_vm1, 0.0, %v552_v27  ;;  %v565_v33 = vmul.f32 %v563_v20, %v552_v27  ;;  %v576_v37 = vmul.f32 %v574_v23, %v552_v27  ;;  %v587_v38 = vmul.f32 %v585_v24, %v552_v27 }
  0xb1   : > { %v561_v39 = vmul.f32 %v560_v26, %v555_v32  ;;  %v564_v43 = vmul.f32 %v563_v20, %v555_v32  ;;  %v575_v48 = vmul.f32 %v574_v23, %v555_v32  ;;  %v586_v49 = vmul.f32 %v585_v24, %v555_v32  ;;  %853 = vmatpush.msra.mxu3 %v3167_v41  ;;  %v865_v26 = vld [vmem:[%s3859_s5] sm:$0x3] }
  0xb2   : > { %v570_v50 = vrot.slane %v565_v33, 1  ;;  %v581_v1 = vrot.slane %v576_v37, 2  ;;  %v592_v4 = vrot.slane %v587_v38, 3  ;;  %v876_v27 = vperm.slane %v865_v26, 0 }
  0xb3   : > { %v562_v55 = vadd.f32 %v2894_v30, %v561_v39  ;;  %v569_v63 = vrot.slane %v564_v43, 1  ;;  %v580_v0 = vrot.slane %v575_v48, 2  ;;  %v591_v3 = vrot.slane %v586_v49, 3  ;;  %855 = vmatpush.msra.mxu3 %v3169_v42 }
  0xb4   : > { %v883_v28 = vperm.slane %v865_v26, 1 }
  0xb5   : > { %v571_v2 = vsel %vm568_vm2, %v569_v63, %v570_v50  ;;  %v582_v56 = vsel %vm579_vm3, %v580_v0, %v581_v1  ;;  %v593_v57 = vsel %vm590_vm4, %v591_v3, %v592_v4  ;;  %857 = vmatpush.msra.mxu3 %v3185_v47  ;;  %v897_v63 = vmul.f32 1.442695, %v895_v54 }
  0xb6   : > { %v573_v44 = vadd.f32 %v571_v2, %v562_v55  ;;  %v896_v55 = vld [vmem:[%s3861_s7 + $0x8] sm:$0xff] }
  0xb7   : > { %859 = vmatpush.msra.mxu3 %v3210_v62  ;;  %v899_v0 = vmul.f32 1.442695, %v896_v55 }
  0xb8   : > { %v584_v45 = vadd.f32 %v582_v56, %v573_v44 }
  0xba   : > { %v595_v46 = vadd.f32 %v593_v57, %v584_v45 }
  0xbc   : > { %v596_v34 = vsub.f32 0.0, %v595_v46 }
  0xbe   : > { %v597_v51 = vmul.f32 1.442695, %v596_v34 }
  0xc0   : > { %2897 = vpow2.f32 %v597_v51 }
  0xc6   : > { %v2898_v35 = vpop.eup %2897 }
  0xc7   : > { %v599_v36 = vadd.f32 1.0, %v2898_v35 }
  0xc9   : > { %2899 = vrcp.f32 %v599_v36  ;;  %v611_v58 = vand.u32 2147483648, %v599_v36  ;;  %v609_v41 = vand.u32 2147483647, %v599_v36  ;;  %vm605_vm6 = vweird.f32 %v599_v36 }
  0xcb   : > { %v612_v61 = vor.u32 1.1754944e-38, %v611_v58  ;;  %vm610_vm8 = vcmp.eq.f32.partialorder %v609_v41, 8.507059e+37 }
  0xcf   : > { %v2900_v40 = vpop.eup %2899 }
  0xd0   : > { %v601_v52 = vmul.f32 %v2900_v40, %v599_v36  ;;  %vm606_vm5 = vweird.f32 %v2900_v40 }
  0xd1   : > { %vm607_vm7 = vmor %vm605_vm6, %vm606_vm5  ;;  %vm2452_vm5 = vcmask 1041408   ;;  %vm2455_vm6 = vcmask 1043456  }
  0xd2   : > { %v602_v53 = vsub.f32 1.0, %v601_v52 }
  0xd4   : > { %v603_v59 = vmul.f32 %v2900_v40, %v602_v53 }
  0xd6   : > { %v604_v60 = vadd.f32 %v2900_v40, %v603_v59 }
  0xd8   : > { %v608_v5 = vsel %vm607_vm7, %v2900_v40, %v604_v60 }
  0xd9   : > { %v613_v42 = vsel %vm610_vm8, %v612_v61, %v608_v5  ;;  %v3013_v61 = vmov 2  }
  0xda   : > { %v3298_v47 = vmul.f32 %v613_v42, %v595_v46  ;;  %v3014_v42 = vmov 4  }
  0xdc   : > { %v626_v62 = vsel %vm624_vm9, %v3298_v47, 0 }
  0xdd   : > { %v652_v6 = vand.u32 4294901760, %v626_v62 }
  0xdf   : > { %718 = vmatmul.f32.vlgmr.msrb.gmra.mxu3 %v652_v6  ;;  %v653_v7 = vsub.f32 %v626_v62, %v652_v6  ;;  %v3015_v62 = vmov 3  }
  0xe1   : > { %756 = vmatmul.f32.vlgmr.msra.gmra.mxu0 %v653_v7  ;;  %v654_v8 = vand.u32 4294901760, %v653_v7 }
  0xe3   : > { %787 = vmatmul.f32.vlgmr.msra.gmra.mxu1 %v654_v8  ;;  %v655_v9 = vsub.f32 %v653_v7, %v654_v8  ;;  %v3016_v7 = vmov 5   ;;  %v3017_v8 = vmov 6  }
  0xe5   : > { %v656_v10 = vand.u32 4294901760, %v655_v9 }
  0xe7   : > { %657 = vmatmul.f32.vlgmr.msrb.gmra.mxu2 %v656_v10  ;;  %861 = vmatmul.f32.vlgmr.msra.gmra.mxu3 %v652_v6  ;;  %v3018_v10 = vmov 7  }
  0xef   : > { %832 = vmatmul.f32.vlgmr.msra.gmra.mxu2 %v652_v6 }
 0x15e   : > { %v757_v16 = vpop.f32.mrf.mxu0 }
 0x160   : > { %v788_v18 = vpop.f32.mrf.mxu1 }
 0x162   : > { %v719_v13 = vpop.f32.mrf.mxu3 }
 0x16a   : > { %v658_v14 = vpop.f32.mrf.mxu2  ;;  %v862_v23 = vpop.f32.mrf.mxu3 }
 0x16b   : > { %v720_v15 = vadd.f32 %v719_v13, %v658_v14 }
 0x16d   : > { %v758_v17 = vadd.f32 %v757_v16, %v720_v15 }
 0x16f   : > { %v789_v19 = vadd.f32 %v788_v18, %v758_v17 }
 0x172   : > { %v833_v20 = vpop.f32.mrf.mxu2 }
 0x173   : > { %v834_v21 = vadd.f32 %v833_v20, %v789_v19 }
 0x175   : > { %v3305_v24 = vadd.f32 %v862_v23, %v834_v21 }
 0x177   : > { %963 = vrot.lane.b32.xlu2 %v3305_v24, %s3011_s25  ;;  %880 = vperm.xlu1 %2877, %v3305_v24   ;;  %v1521_v59 = vrot.slane %v3305_v24, 3  ;;  %v1149_v5 = vrot.slane %v3305_v24, 1  ;;  %v1335_v6 = vrot.slane %v3305_v24, 2  ;;  %v1707_v9 = vrot.slane %v3305_v24, 4 }
 0x178   : > { %904 = vrot.lane.b32.xlu0 %v3305_v24, %s3012_s26  ;;  %s2751_s26 = scalar_lea.hbm %s3864_s10, %s2822_s20 }
 0x179   : > { %s2755_s29 = sshll.u32 %s2751_s26, 4  ;;  %s2756_s29 = int_to_ptr.hbm [resolvable:$true] %s2755_s29 }
 0x17a   : > { %s2959_s30 = sshra.s32 %s2756_s29, 4  ;;  %s2960_s30 = int_to_ptr.hbm [resolvable:$true] %s2959_s30 }
 0x17b   : > { %s2961_s11 = scalar_lea.hbm %s2960_s30, 8  ;;  %p2966_p0 = scmp.lt.s32.totalorder %s2960_s30, %s3864_s10 }
 0x17c   : > { %p2962_p11 = scmp.ne.s32.totalorder %s2960_s30, %s2961_s11  ;;  %p2967_p1 = scmp.lt.s32.totalorder %s2965_s18, %s2961_s11 }
 0x17e   : > { %p2963_p12 = pnand %p2962_p11, %p3113_p5  ;;  %p2968_p2 = por %p2967_p1, %p2966_p0 }
 0x180   : > { %873 = vperm.xlu0 %2876, %v3305_v24   ;;  %p2964_p13 = pneg %p2963_p12 }
 0x182   : > { %p2969_p3 = pnand %p2968_p2, %p2964_p13 }
 0x188   : > { %2883 = vset.pattern.permute.xlu0 %v3009_v11 }
 0x1d1   : > { %v964_v15 = vpop.permute.xlu2 %963 }
 0x1e9   : > { %v881_v30 = vpop.permute.xlu1 %880 }
 0x1ea   : > { %v905_v25 = vpop.permute.xlu0 %904  ;;  %v884_v33 = vmul.f32 %v883_v28, %v881_v30  ;;  %v966_v28 = vsel %vm965_vm10, %v964_v15, 0  ;;  %v2079_v30 = vrot.slane %v3305_v24, 6 }
 0x1eb   : > { %907 = vxpose.xlu1.b32.start.end [1/1] (short) (narrow) %v905_v25, 16 }
 0x1f2   : > { %v874_v31 = vpop.permute.xlu0 %873 }
 0x1f3   : > { %v877_v32 = vmul.f32 %v876_v27, %v874_v31 }
 0x1f5   : > { %v878_v37 = vadd.f32 %v2895_v29, %v877_v32 }
 0x1f7   : > { %v885_v38 = vadd.f32 %v884_v33, %v878_v37  ;;  %v3391_v37 = vand.u32 4294901760, %v966_v28 }
 0x1f9   : > { %v887_v39 = vand.u32 2147483647, %v885_v38  ;;  %v886_v3 = vmax.f32 %v885_v38, 0.0 }
 0x1fb   : > { %v888_v43 = vsub.f32 0.0, %v887_v39 }
 0x1fd   : > { %v889_v48 = vmul.f32 1.442695, %v888_v43 }
 0x1ff   : > { %2901 = vpow2.f32 %v889_v48 }
 0x205   : > { %v2902_v49 = vpop.eup %2901 }
 0x206   : > { %v891_v50 = vadd.f32 1.0, %v2902_v49  ;;  %v3397_v49 = vsub.f32 %v966_v28, %v3391_v37 }
 0x208   : > { %2903 = vlog2.f32 %v891_v50 }
 0x209   : > { %2905 = vpow2.f32 %v897_v63 }
 0x20a   : > { %2907 = vpow2.f32 %v899_v0 }
 0x20e   : > { %v2904_v1 = vpop.eup %2903 }
 0x20f   : > { %v893_v2 = vmul.f32 0.6931472, %v2904_v1  ;;  %v2906_v44 = vpop.eup %2905  ;;  %v988_v1 = vand.u32 4294901760, %v3397_v49 }
 0x210   : > { %v2908_v56 = vpop.eup %2907  ;;  %v3327_v45 = vsub.f32 0.0, %v2906_v44 }
 0x211   : > { %v3325_v4 = vadd.f32 %v893_v2, %v886_v3  ;;  %v3331_v34 = vsub.f32 0.0, %v2908_v56 }
 0x213   : > { %v1871_v57 = vperm.slane %v3325_v4, 5  ;;  %v2057_v46 = vperm.slane %v3325_v4, 6  ;;  %v2243_v40 = vperm.slane %v3325_v4, 7  ;;  %v939_v14 = vperm.slane %v3325_v4, 0 }
 0x214   : > { %v3382_v23 = vmul.f32 %v3325_v4, %v3298_v47  ;;  %v1127_v25 = vperm.slane %v3325_v4, 1  ;;  %v1313_v55 = vperm.slane %v3325_v4, 2 }
 0x215   : > { %v3334_v51 = vmul.f32 %v1871_v57, %v3327_v45  ;;  %v3337_v35 = vmul.f32 %v2057_v46, %v3327_v45  ;;  %v3340_v36 = vmul.f32 %v1871_v57, %v3331_v34  ;;  %v3344_v52 = vmul.f32 %v2057_v46, %v3331_v34 }
 0x216   : > { %v3347_v53 = vmul.f32 %v2243_v40, %v3327_v45  ;;  %v3350_v58 = vmul.f32 %v2243_v40, %v3331_v34  ;;  %v940_v17 = vmul.f32 %v939_v14, %v3327_v45  ;;  %v941_v21 = vmul.f32 %v939_v14, %v3331_v34 }
 0x217   : > { %v956_v29 = vperm.slane %v3382_v23, 0  ;;  %v1128_v38 = vmul.f32 %v1127_v25, %v3327_v45  ;;  %v1129_v3 = vmul.f32 %v1127_v25, %v3331_v34  ;;  %v1314_v46 = vmul.f32 %v1313_v55, %v3327_v45 }
 0x218   : > { %v942_v19 = vmul.f32 1.442695, %v940_v17  ;;  %v944_v26 = vmul.f32 1.442695, %v941_v21  ;;  %v1142_v40 = vperm.slane %v3382_v23, 1 }
 0x219   : > { %v1130_v50 = vmul.f32 1.442695, %v1128_v38 }
 0x24d   : > { %1522 = vrot.lane.b32.xlu1 %v1521_v59, %s3011_s25 }
 0x28f   : > { %v923_v41 = vpop.trf.xlu1 }
 0x290   : > { %948 = vperm.xlu2 %2878, %v923_v41  }
 0x297   : > { %v3354_v60 = vpop.trf.xlu1 }
 0x298   : > { %2879 = vset.pattern.permute.xlu2 %v3009_v11  ;;  %1139 = vperm.xlu0 %2883, %v3354_v60   ;;  %v2466_v11 = vsub.f32 0.0, %v3254_v22 }
 0x299   : > { %1135 = vperm.xlu2 %2879, %v923_v41  }
 0x29a   : > { %v2467_v13 = vmul.f32 1.442695, %v2466_v11 }
 0x29c   : > { %2909 = vpow2.f32 %v2467_v13 }
 0x2a0   : > { %2884 = vset.pattern.permute.xlu0 %v3013_v61 }
 0x2a1   : > { %2880 = vset.pattern.permute.xlu2 %v3010_v12  ;;  %1325 = vperm.xlu0 %2884, %v3354_v60   ;;  %v1893_v12 = vrot.slane %v3305_v24, 5 }
 0x2a2   : > { %953 = vperm.xlu2 %2880, %v3354_v60   ;;  %v2910_v16 = vpop.eup %2909 }
 0x2a3   : > { %v3375_v18 = vadd.f32 1.0, %v2910_v16 }
 0x2a5   : > { %2911 = vrcp.f32 %v3375_v18  ;;  %vm2475_vm12 = vweird.f32 %v3375_v18 }
 0x2a6   : > { %2913 = vpow2.f32 %v942_v19 }
 0x2a7   : > { %2915 = vpow2.f32 %v944_v26 }
 0x2a8   : > { %2917 = vpow2.f32 %v1130_v50 }
 0x2a9   : > { %2885 = vset.pattern.permute.xlu0 %v3014_v42 }
 0x2aa   : > { %1693 = vperm.xlu0 %2885, %v923_v41   ;;  %1150 = vrot.lane.b32.xlu2 %v1149_v5, %s3011_s25  ;;  %v1132_v5 = vmul.f32 1.442695, %v1129_v3 }
 0x2ab   : > { %2881 = vset.pattern.permute.xlu2 %v3013_v61  ;;  %v3385_v27 = vpop.eup %2911  ;;  %v2481_v61 = vand.u32 2147483648, %v3375_v18 }
 0x2ac   : > { %v2914_v31 = vpop.eup %2913  ;;  %v2471_v39 = vmul.f32 %v3385_v27, %v3375_v18  ;;  %vm2476_vm11 = vweird.f32 %v3385_v27  ;;  %2919 = vpow2.f32 %v1132_v5 }
 0x2ad   : > { %v959_v43 = vmul.f32 0.0, %v2914_v31  ;;  %v2916_v63 = vpop.eup %2915  ;;  %vm3423_vm13 = vmor %vm2475_vm12, %vm2476_vm11  ;;  %v2482_v15 = vor.u32 1.1754944e-38, %v2481_v61 }
 0x2ae   : > { %v2472_v54 = vsub.f32 1.0, %v2471_v39  ;;  %v960_v57 = vmul.f32 0.0, %v2916_v63 }
 0x2b0   : > { %v2473_v44 = vmul.f32 %v3385_v27, %v2472_v54 }
 0x2b2   : > { %2886 = vset.pattern.permute.xlu0 %v3015_v62  ;;  %1321 = vperm.xlu2 %2881, %v923_v41  }
 0x2b3   : > { %1511 = vperm.xlu0 %2886, %v3354_v60  }
 0x2ba   : > { %1336 = vrot.lane.b32.xlu2 %v1335_v6, %s3011_s25 }
 0x2bb   : > { %2887 = vset.pattern.permute.xlu0 %v3016_v7  ;;  %2882 = vset.pattern.permute.xlu2 %v3015_v62 }
 0x2bc   : > { %1879 = vperm.xlu0 %2887, %v923_v41  }
 0x2c2   : > { %1507 = vperm.xlu2 %2882, %v923_v41  }
 0x2c4   : > { %2889 = vset.pattern.permute.xlu0 %v3017_v8 }
 0x2c5   : > { %2065 = vperm.xlu0 %2889, %v923_v41  }
 0x2ca   : > { %1708 = vrot.lane.b32.xlu2 %v1707_v9, %s3011_s25  ;;  %v2265_v9 = vrot.slane %v3305_v24, 7 }
 0x2cb   : > { %2888 = vset.pattern.permute.xlu2 %v3014_v42  ;;  %v2474_v42 = vadd.f32 %v3385_v27, %v2473_v44 }
 0x2cd   : > { %2893 = vset.pattern.permute.xlu0 %v3018_v10  ;;  %v2478_v17 = vsel %vm3423_vm13, %v3385_v27, %v2474_v42 }
 0x2ce   : > { %2251 = vperm.xlu0 %2893, %v923_v41  }
 0x2d2   : > { %1697 = vperm.xlu2 %2888, %v3354_v60  }
 0x2da   : > { %1894 = vrot.lane.b32.xlu2 %v1893_v12, %s3011_s25 }
 0x2db   : > { %2890 = vset.pattern.permute.xlu2 %v3016_v7  ;;  %v1316_v7 = vmul.f32 1.442695, %v1314_v46 }
 0x2dd   : > { %2921 = vpow2.f32 %v1316_v7 }
 0x2e2   : > { %1883 = vperm.xlu2 %2890, %v3354_v60  }
 0x2ea   : > { %v949_v20 = vpop.permute.xlu2 %948  ;;  %2891 = vset.pattern.permute.xlu2 %v3017_v8  ;;  %v2918_v8 = vpop.eup %2917 }
 0x2eb   : > { %2069 = vperm.xlu2 %2891, %v3354_v60   ;;  %v957_v32 = vmul.f32 %v956_v29, %v949_v20 }
 0x2ed   : > { %v961_v48 = vadd.f32 %v959_v43, %v957_v32  ;;  %v1499_v43 = vperm.slane %v3325_v4, 3 }
 0x2ef   : > { %v3400_v0 = vand.u32 4294901760, %v961_v48  ;;  %v1145_v11 = vmul.f32 %v2918_v8, %v961_v48 }
 0x2f1   : > { %v1016_v41 = vsub.f32 %v961_v48, %v3400_v0 }
 0x2f3   : > { %v1136_v33 = vpop.permute.xlu2 %1135  ;;  %2080 = vrot.lane.b32.xlu2 %v2079_v30, %s3011_s25  ;;  %v1017_v13 = vand.u32 4294901760, %v1016_v41 }
 0x2f4   : > { %2892 = vset.pattern.permute.xlu2 %v3018_v10  ;;  %v1143_v62 = vmul.f32 %v1142_v40, %v1136_v33  ;;  %v2479_v10 = vand.u32 2147483647, %v3375_v18  ;;  %v1315_v18 = vmul.f32 %v1313_v55, %v3331_v34  ;;  %v2920_v33 = vpop.eup %2919  ;;  %v1328_v55 = vperm.slane %v3382_v23, 2 }
 0x2f5   : > { %v1018_v28 = vsub.f32 %v1016_v41, %v1017_v13  ;;  %v2922_v48 = vpop.eup %2921 }
 0x2f6   : > { %v1147_v19 = vadd.f32 %v1145_v11, %v1143_v62  ;;  %vm2480_vm14 = vcmp.eq.f32.partialorder %v2479_v10, 8.507059e+37 }
 0x2f7   : > { %v2483_v27 = vsel %vm2480_vm14, %v2482_v15, %v2478_v17  ;;  %v1019_v63 = vand.u32 4294901760, %v1018_v28  ;;  %v1523_v17 = vpop.permute.xlu1 %1522 }
 0x2f8   : > { %v3438_v30 = vand.u32 4294901760, %v1147_v19  ;;  %v2485_v39 = vmul.f32 %v2483_v27, %v3254_v22  ;;  %v1514_v27 = vperm.slane %v3382_v23, 3 }
 0x2fa   : > { %v1202_v22 = vsub.f32 %v1147_v19, %v3438_v30 }
 0x2fb   : > { %2255 = vperm.xlu2 %2892, %v3354_v60   ;;  %v989_v60 = vsub.f32 %v3397_v49, %v988_v1 }
 0x2fc   : > { %v954_v2 = vpop.permute.xlu2 %953  ;;  %v1203_v5 = vand.u32 4294901760, %v1202_v22 }
 0x2fd   : > { %v958_v56 = vmul.f32 %v956_v29, %v954_v2  ;;  %v990_v16 = vand.u32 4294901760, %v989_v60  ;;  %v1318_v29 = vmul.f32 1.442695, %v1315_v18  ;;  %v1331_v2 = vmul.f32 %v2922_v48, %v1147_v19 }
 0x2ff   : > { %v962_v59 = vadd.f32 %v960_v57, %v958_v56  ;;  %2923 = vpow2.f32 %v1318_v29 }
 0x301   : > { %v3415_v6 = vand.u32 4294901760, %v962_v59  ;;  %v1146_v50 = vmul.f32 %v2920_v33, %v962_v59 }
 0x303   : > { %v1010_v12 = vsub.f32 %v962_v59, %v3415_v6  ;;  %983 = vmatpush.msrb.mxu0 %v3415_v6  ;;  %1119 = vmatpush.msrb.mxu3 %v3415_v6  ;;  %v1500_v59 = vmul.f32 %v1499_v43, %v3327_v45 }
 0x304   : > { %2266 = vrot.lane.b32.xlu2 %v2265_v9, %s3011_s25  ;;  %v1151_v24 = vpop.permute.xlu2 %1150 }
 0x305   : > { %v1152_v20 = vsel %vm965_vm10, %v1151_v24, 0  ;;  %985 = vmatpush.msrb.mxu0 %v3400_v0  ;;  %1121 = vmatpush.msrb.mxu3 %v3400_v0  ;;  %v1011_v21 = vand.u32 4294901760, %v1010_v12  ;;  %v2924_v42 = vpop.eup %2923  ;;  %v1502_v7 = vmul.f32 1.442695, %v1500_v59  ;;  %v1501_v24 = vmul.f32 %v1499_v43, %v3331_v34 }
 0x306   : > { %v3435_v25 = vand.u32 4294901760, %v1152_v20  ;;  %991 = vmatmul.f32.vlgmr.msrb.gmra.mxu0 %v990_v16  ;;  %1123 = vmatmul.f32.vlgmr.msrb.gmra.mxu3 %v3391_v37 }
 0x307   : > { %1042 = vmatpush.msra.mxu0 %v1010_v12  ;;  %1094 = vmatpush.msrb.mxu2 %v1011_v21  ;;  %v1012_v26 = vsub.f32 %v1010_v12, %v1011_v21  ;;  %2925 = vpow2.f32 %v1502_v7  ;;  %v1504_v29 = vmul.f32 1.442695, %v1501_v24 }
 0x308   : > { %v1173_v31 = vsub.f32 %v1152_v20, %v3435_v25 }
 0x309   : > { %1045 = vmatpush.msra.mxu0 %v1016_v41  ;;  %1098 = vmatpush.msrb.mxu2 %v1017_v13  ;;  %v1013_v32 = vand.u32 4294901760, %v1012_v26  ;;  %v1685_v41 = vperm.slane %v3325_v4, 4  ;;  %v1204_v13 = vsub.f32 %v1202_v22, %v1203_v5  ;;  %v1524_v26 = vsel %vm965_vm10, %v1523_v17, 0 }
 0x30a   : > { %1100 = vmatmul.f32.vlgmr.msrb.gmra.mxu2 %v3391_v37  ;;  %v1140_v38 = vpop.permute.xlu0 %1139  ;;  %v1174_v44 = vand.u32 4294901760, %v1173_v31  ;;  %v1886_v17 = vperm.slane %v3382_v23, 5 }
 0x30b   : > { %v1144_v54 = vmul.f32 %v1142_v40, %v1140_v38  ;;  %1014 = vmatpush.msrb.mxu1 %v1013_v32  ;;  %v1205_v20 = vand.u32 4294901760, %v1204_v13  ;;  %v1687_v48 = vmul.f32 %v1685_v41, %v3331_v34 }
 0x30c   : > { %2487 = vrot.lane.b32.xlu2 %v2485_v39, %s3019_s21  ;;  %v1322_v3 = vpop.permute.xlu2 %1321  ;;  %v1175_v61 = vsub.f32 %v1173_v31, %v1174_v44 }
 0x30d   : > { %v1148_v56 = vadd.f32 %v1146_v50, %v1144_v54  ;;  %v1329_v57 = vmul.f32 %v1328_v55, %v1322_v3  ;;  %1020 = vmatpush.msrb.mxu1 %v1019_v63  ;;  %v2926_v39 = vpop.eup %2925  ;;  %v3483_v50 = vand.u32 4294901760, %v1524_v26  ;;  %v1690_v34 = vmul.f32 1.442695, %v1687_v48 }
 0x30e   : > { %1022 = vmatmul.f32.vlgmr.msrb.gmra.mxu1 %v3391_v37  ;;  %1048 = vmatmul.f32.vlgmr.msra.gmra.mxu0 %v3397_v49  ;;  %v1176_v10 = vand.u32 4294901760, %v1175_v61 }
 0x30f   : > { %v1168_v46 = vand.u32 4294901760, %v1148_v56  ;;  %v3448_v40 = vadd.f32 %v1331_v2, %v1329_v57  ;;  %1067 = vmatpush.msra.mxu1 %v3415_v6  ;;  %v1332_v4 = vmul.f32 %v2924_v42, %v1148_v56 }
 0x311   : > { %v1196_v60 = vsub.f32 %v1148_v56, %v1168_v46  ;;  %1069 = vmatpush.msra.mxu1 %v3400_v0  ;;  %1169 = vmatpush.msrb.mxu0 %v1168_v46  ;;  %v3455_v37 = vand.u32 4294901760, %v3448_v40  ;;  %v1686_v0 = vmul.f32 %v1685_v41, %v3327_v45  ;;  %v3490_v56 = vsub.f32 %v1524_v26, %v3483_v50 }
 0x312   : > { %1253 = vmatpush.msra.mxu3 %v1168_v46 }
 0x313   : > { %1171 = vmatpush.msrb.mxu0 %v3438_v30  ;;  %1228 = vmatpush.msra.mxu2 %v1196_v60  ;;  %v1326_v62 = vpop.permute.xlu0 %1325  ;;  %v1197_v6 = vand.u32 4294901760, %v1196_v60  ;;  %v1388_v45 = vsub.f32 %v3448_v40, %v3455_v37  ;;  %v1688_v49 = vmul.f32 1.442695, %v1686_v0  ;;  %v1546_v42 = vand.u32 4294901760, %v3490_v56 }
 0x314   : > { %1255 = vmatpush.msra.mxu3 %v3438_v30  ;;  %v1330_v8 = vmul.f32 %v1328_v55, %v1326_v62  ;;  %v1337_v9 = vpop.permute.xlu2 %1336  ;;  %v1517_v55 = vmul.f32 %v2926_v39, %v3448_v40  ;;  %v1876_v39 = vmul.f32 1.442695, %v3340_v36 }
 0x315   : > { %1259 = vmatmul.f32.vlgmr.msra.gmra.mxu3 %v1174_v44  ;;  %v1338_v11 = vsel %vm965_vm10, %v1337_v9, 0  ;;  %1231 = vmatpush.msra.mxu2 %v1202_v22  ;;  %v1198_v12 = vsub.f32 %v1196_v60, %v1197_v6  ;;  %v1389_v28 = vand.u32 4294901760, %v1388_v45  ;;  %2927 = vpow2.f32 %v1688_v49 }
 0x316   : > { %v3461_v14 = vadd.f32 %v1332_v4, %v1330_v8  ;;  %v3463_v15 = vand.u32 4294901760, %v1338_v11  ;;  %1280 = vmatpush.msra.mxu0 %v1197_v6  ;;  %1073 = vmatmul.f32.vlgmr.msra.gmra.mxu1 %v988_v1  ;;  %2929 = vpow2.f32 %v1504_v29 }
 0x317   : > { %1177 = vmatmul.f32.vlgmr.msrb.gmra.mxu0 %v1176_v10  ;;  %1234 = vmatmul.f32.vlgmr.msra.gmra.mxu2 %v1173_v31  ;;  %v1199_v16 = vand.u32 4294901760, %v1198_v12  ;;  %v1390_v2 = vsub.f32 %v1388_v45, %v1389_v28  ;;  %2931 = vpow2.f32 %v1690_v34  ;;  %v2062_v34 = vmul.f32 1.442695, %v3344_v52 }
 0x318   : > { %v1354_v18 = vand.u32 4294901760, %v3461_v14  ;;  %v3472_v19 = vsub.f32 %v1338_v11, %v3463_v15  ;;  %1284 = vmatpush.msra.mxu0 %v1203_v5 }
 0x319   : > { %1200 = vmatpush.msrb.mxu1 %v1199_v16  ;;  %v1391_v22 = vand.u32 4294901760, %v1390_v2 }
 0x31a   : > { %v1382_v1 = vsub.f32 %v3461_v14, %v1354_v18  ;;  %v1360_v21 = vand.u32 4294901760, %v3472_v19  ;;  %1355 = vmatpush.msrb.mxu2 %v1354_v18 }
 0x31b   : > { %1206 = vmatpush.msrb.mxu1 %v1205_v20  ;;  %v2928_v57 = vpop.eup %2927 }
 0x31c   : > { %v1361_v31 = vsub.f32 %v3472_v19, %v1360_v21  ;;  %v1694_v32 = vpop.permute.xlu0 %1693  ;;  %1357 = vmatpush.msrb.mxu2 %v3455_v37  ;;  %v1508_v33 = vpop.permute.xlu2 %1507  ;;  %v1383_v38 = vand.u32 4294901760, %v1382_v1  ;;  %1414 = vmatpush.msrb.mxu0 %v1382_v1 }
 0x31d   : > { %1305 = vmatpush.msra.mxu1 %v1168_v46  ;;  %v1515_v43 = vmul.f32 %v1514_v27, %v1508_v33  ;;  %v1874_v46 = vmul.f32 1.442695, %v3334_v51  ;;  %v2930_v61 = vpop.eup %2929  ;;  %v2060_v51 = vmul.f32 1.442695, %v3337_v35  ;;  %v2246_v33 = vmul.f32 1.442695, %v3347_v53 }
 0x31e   : > { %v1362_v54 = vand.u32 4294901760, %v1361_v31  ;;  %1208 = vmatmul.f32.vlgmr.msrb.gmra.mxu1 %v3435_v25  ;;  %1466 = vmatpush.msra.mxu2 %v1383_v38  ;;  %v1384_v63 = vsub.f32 %v1382_v1, %v1383_v38  ;;  %v1518_v6 = vmul.f32 %v2930_v61, %v3461_v14  ;;  %v2932_v11 = vpop.eup %2931 }
 0x31f   : > { %1286 = vmatmul.f32.vlgmr.msra.gmra.mxu0 %v3435_v25  ;;  %1307 = vmatpush.msra.mxu1 %v3438_v30  ;;  %v1519_v3 = vadd.f32 %v1517_v55, %v1515_v43  ;;  %v1700_v30 = vperm.slane %v3382_v23, 4  ;;  %2933 = vpow2.f32 %v1874_v46 }
 0x320   : > { %1417 = vmatpush.msrb.mxu0 %v1388_v45  ;;  %v1385_v44 = vand.u32 4294901760, %v1384_v63  ;;  %1363 = vmatmul.f32.vlgmr.msrb.gmra.mxu2 %v1362_v54  ;;  %2935 = vpow2.f32 %v2060_v51 }
 0x321   : > { %1439 = vmatpush.msrb.mxu1 %v1354_v18  ;;  %1470 = vmatpush.msra.mxu2 %v1389_v28  ;;  %v3495_v40 = vand.u32 4294901760, %v1519_v3  ;;  %v1703_v59 = vmul.f32 %v2928_v57, %v1519_v3  ;;  %v1701_v62 = vmul.f32 %v1700_v30, %v1694_v32  ;;  %2937 = vpow2.f32 %v2246_v33 }
 0x322   : > { %1386 = vmatpush.msrb.mxu3 %v1385_v44  ;;  %v2072_v44 = vperm.slane %v3382_v23, 6  ;;  %2939 = vpow2.f32 %v1876_v39 }
 0x323   : > { %1441 = vmatpush.msrb.mxu1 %v3455_v37  ;;  %v1705_v9 = vadd.f32 %v1703_v59, %v1701_v62  ;;  %v1574_v0 = vsub.f32 %v1519_v3, %v3495_v40  ;;  %2941 = vpow2.f32 %v2062_v34 }
 0x324   : > { %v1709_v41 = vpop.permute.xlu2 %1708  ;;  %1392 = vmatpush.msrb.mxu3 %v1391_v22 }
 0x325   : > { %v1710_v60 = vsel %vm965_vm10, %v1709_v41, 0  ;;  %v1512_v5 = vpop.permute.xlu0 %1511  ;;  %1394 = vmatmul.f32.vlgmr.msrb.gmra.mxu3 %v3463_v15  ;;  %v1575_v13 = vand.u32 4294901760, %v1574_v0  ;;  %v3520_v14 = vand.u32 4294901760, %v1705_v9  ;;  %v2934_v16 = vpop.eup %2933 }
 0x326   : > { %v1516_v7 = vmul.f32 %v1514_v27, %v1512_v5  ;;  %1309 = vmatmul.f32.vlgmr.msra.gmra.mxu1 %v3435_v25  ;;  %1491 = vmatpush.msra.mxu3 %v1354_v18  ;;  %v3504_v4 = vand.u32 4294901760, %v1710_v60  ;;  %v1547_v25 = vsub.f32 %v3490_v56, %v1546_v42  ;;  %v1889_v27 = vmul.f32 %v2934_v16, %v1705_v9 }
 0x327   : > { %1420 = vmatmul.f32.vlgmr.msrb.gmra.mxu0 %v3472_v19  ;;  %v1576_v29 = vsub.f32 %v1574_v0, %v1575_v13  ;;  %v1760_v19 = vsub.f32 %v1705_v9, %v3520_v14  ;;  %v2258_v9 = vperm.slane %v3382_v23, 7 }
 0x328   : > { %v1520_v8 = vadd.f32 %v1518_v6, %v1516_v7  ;;  %1493 = vmatpush.msra.mxu3 %v3455_v37  ;;  %1472 = vmatmul.f32.vlgmr.msra.gmra.mxu2 %v3463_v15  ;;  %v3515_v35 = vsub.f32 %v1710_v60, %v3504_v4  ;;  %v1548_v18 = vand.u32 4294901760, %v1547_v25  ;;  %v2248_v25 = vmul.f32 1.442695, %v3350_v58 }
 0x329   : > { %v1577_v63 = vand.u32 4294901760, %v1576_v29  ;;  %v1761_v53 = vand.u32 4294901760, %v1760_v19 }
 0x32a   : > { %v3512_v10 = vand.u32 4294901760, %v1520_v8  ;;  %v1704_v45 = vmul.f32 %v2932_v11, %v1520_v8  ;;  %v1732_v28 = vand.u32 4294901760, %v3515_v35  ;;  %2943 = vpow2.f32 %v2248_v25 }
 0x32b   : > { %v1762_v59 = vsub.f32 %v1760_v19, %v1761_v53 }
 0x32c   : > { %v1568_v12 = vsub.f32 %v1520_v8, %v3512_v10  ;;  %1541 = vmatpush.msra.mxu0 %v3512_v10  ;;  %1625 = vmatpush.msrb.mxu3 %v3512_v10  ;;  %v1698_v37 = vpop.permute.xlu2 %1697  ;;  %v1733_v54 = vsub.f32 %v3515_v35, %v1732_v28 }
 0x32d   : > { %v1702_v24 = vmul.f32 %v1700_v30, %v1698_v37  ;;  %1495 = vmatmul.f32.vlgmr.msra.gmra.mxu3 %v3463_v15  ;;  %v1763_v62 = vand.u32 4294901760, %v1762_v59 }
 0x32e   : > { %v1880_v20 = vpop.permute.xlu0 %1879  ;;  %1445 = vmatmul.f32.vlgmr.msrb.gmra.mxu1 %v1360_v21  ;;  %v1569_v49 = vand.u32 4294901760, %v1568_v12  ;;  %1543 = vmatpush.msra.mxu0 %v3495_v40  ;;  %v2936_v21 = vpop.eup %2935  ;;  %v1734_v46 = vand.u32 4294901760, %v1733_v54 }
 0x32f   : > { %v3526_v1 = vadd.f32 %v1704_v45, %v1702_v24  ;;  %v1887_v26 = vmul.f32 %v1886_v17, %v1880_v20  ;;  %1600 = vmatpush.msrb.mxu2 %v1568_v12  ;;  %1627 = vmatpush.msrb.mxu3 %v3495_v40  ;;  %v2938_v52 = vpop.eup %2937 }
 0x330   : > { %1549 = vmatmul.f32.vlgmr.msra.gmra.mxu0 %v1548_v18  ;;  %v1570_v15 = vsub.f32 %v1568_v12, %v1569_v49  ;;  %v2940_v5 = vpop.eup %2939 }
 0x331   : > { %v3535_v31 = vand.u32 4294901760, %v3526_v1  ;;  %v1891_v32 = vadd.f32 %v1889_v27, %v1887_v26  ;;  %1603 = vmatpush.msrb.mxu2 %v1574_v0  ;;  %1652 = vmatpush.msrb.mxu0 %v1569_v49  ;;  %v1890_v7 = vmul.f32 %v2940_v5, %v3526_v1 }
 0x332   : > { %1606 = vmatmul.f32.vlgmr.msrb.gmra.mxu2 %v3490_v56  ;;  %v1571_v38 = vand.u32 4294901760, %v1570_v15 }
 0x333   : > { %v1754_v43 = vsub.f32 %v3526_v1, %v3535_v31  ;;  %1656 = vmatpush.msrb.mxu0 %v1575_v13  ;;  %1727 = vmatpush.msra.mxu2 %v3535_v31  ;;  %v2075_v48 = vmul.f32 %v2936_v21, %v1891_v32  ;;  %v3561_v60 = vand.u32 4294901760, %v1891_v32 }
 0x334   : > { %1572 = vmatpush.msra.mxu1 %v1571_v38  ;;  %v1895_v55 = vpop.permute.xlu2 %1894 }
 0x335   : > { %v1896_v2 = vsel %vm965_vm10, %v1895_v55, 0  ;;  %1729 = vmatpush.msra.mxu2 %v3520_v14  ;;  %1786 = vmatpush.msra.mxu0 %v1754_v43  ;;  %v1755_v36 = vand.u32 4294901760, %v1754_v43  ;;  %v1946_v0 = vsub.f32 %v1891_v32, %v3561_v60 }
 0x336   : > { %v3548_v3 = vand.u32 4294901760, %v1896_v2  ;;  %1631 = vmatmul.f32.vlgmr.msrb.gmra.mxu3 %v1546_v42  ;;  %1578 = vmatpush.msra.mxu1 %v1577_v63 }
 0x337   : > { %v2066_v57 = vpop.permute.xlu0 %2065  ;;  %1580 = vmatmul.f32.vlgmr.msra.gmra.mxu1 %v3483_v50  ;;  %1789 = vmatpush.msra.mxu0 %v1760_v19  ;;  %v1756_v22 = vsub.f32 %v1754_v43, %v1755_v36  ;;  %v1947_v58 = vand.u32 4294901760, %v1946_v0 }
 0x338   : > { %v2073_v30 = vmul.f32 %v2072_v44, %v2066_v57  ;;  %1658 = vmatmul.f32.vlgmr.msrb.gmra.mxu0 %v3483_v50  ;;  %1677 = vmatpush.msrb.mxu1 %v3512_v10  ;;  %v3558_v41 = vsub.f32 %v1896_v2, %v3548_v3  ;;  %v2942_v10 = vpop.eup %2941 }
 0x339   : > { %1838 = vmatpush.msrb.mxu2 %v1755_v36  ;;  %v1757_v56 = vand.u32 4294901760, %v1756_v22  ;;  %v1948_v1 = vsub.f32 %v1946_v0, %v1947_v58  ;;  %v2944_v27 = vpop.eup %2943 }
 0x33a   : > { %v2077_v61 = vadd.f32 %v2075_v48, %v2073_v30  ;;  %1679 = vmatpush.msrb.mxu1 %v3495_v40  ;;  %1735 = vmatmul.f32.vlgmr.msra.gmra.mxu2 %v1734_v46  ;;  %v1918_v51 = vand.u32 4294901760, %v3558_v41 }
 0x33b   : > { %1842 = vmatpush.msrb.mxu2 %v1761_v53  ;;  %1758 = vmatpush.msra.mxu3 %v1757_v56 }
 0x33c   : > { %1811 = vmatpush.msra.mxu1 %v3535_v31  ;;  %v1884_v42 = vpop.permute.xlu2 %1883  ;;  %v2261_v6 = vmul.f32 %v2938_v52, %v2077_v61  ;;  %v1919_v16 = vsub.f32 %v3558_v41, %v1918_v51  ;;  %v3583_v24 = vand.u32 4294901760, %v2077_v61 }
 0x33d   : > { %v1888_v40 = vmul.f32 %v1886_v17, %v1884_v42  ;;  %1764 = vmatpush.msra.mxu3 %v1763_v62 }
 0x33e   : > { %1813 = vmatpush.msra.mxu1 %v3520_v14  ;;  %1766 = vmatmul.f32.vlgmr.msra.gmra.mxu3 %v3504_v4  ;;  %v1920_v20 = vand.u32 4294901760, %v1919_v16  ;;  %v2132_v29 = vsub.f32 %v2077_v61, %v3583_v24 }
 0x33f   : > { %v1892_v8 = vadd.f32 %v1890_v7, %v1888_v40  ;;  %1681 = vmatmul.f32.vlgmr.msrb.gmra.mxu1 %v3483_v50  ;;  %1863 = vmatpush.msrb.mxu3 %v3535_v31 }
 0x340   : > { %1792 = vmatmul.f32.vlgmr.msra.gmra.mxu0 %v3515_v35  ;;  %v2252_v11 = vpop.permute.xlu0 %2251 }
 0x341   : > { %v1912_v12 = vand.u32 4294901760, %v1892_v8  ;;  %v2259_v37 = vmul.f32 %v2258_v9, %v2252_v11  ;;  %v2076_v13 = vmul.f32 %v2942_v10, %v1892_v8  ;;  %1865 = vmatpush.msrb.mxu3 %v3520_v14 }
 0x342   : > { %1844 = vmatmul.f32.vlgmr.msrb.gmra.mxu2 %v3504_v4 }
 0x343   : > { %v1940_v50 = vsub.f32 %v1892_v8, %v1912_v12  ;;  %v3581_v45 = vadd.f32 %v2261_v6, %v2259_v37  ;;  %1913 = vmatpush.msrb.mxu0 %v1912_v12  ;;  %1997 = vmatpush.msra.mxu3 %v1912_v12 }
 0x345   : > { %1915 = vmatpush.msrb.mxu0 %v3561_v60  ;;  %1972 = vmatpush.msra.mxu2 %v1940_v50  ;;  %v2070_v17 = vpop.permute.xlu2 %2069  ;;  %v1941_v18 = vand.u32 4294901760, %v1940_v50  ;;  %v2286_v63 = vand.u32 4294901760, %v3581_v45 }
 0x346   : > { %1999 = vmatpush.msra.mxu3 %v3561_v60  ;;  %v2074_v14 = vmul.f32 %v2072_v44, %v2070_v17 }
 0x347   : > { %1867 = vmatmul.f32.vlgmr.msrb.gmra.mxu3 %v3504_v4  ;;  %1817 = vmatmul.f32.vlgmr.msra.gmra.mxu1 %v1732_v28  ;;  %v1942_v49 = vsub.f32 %v1940_v50, %v1941_v18  ;;  %v1949_v4 = vand.u32 4294901760, %v1948_v1  ;;  %v2133_v28 = vand.u32 4294901760, %v2132_v29  ;;  %v2318_v22 = vsub.f32 %v3581_v45, %v2286_v63 }
 0x348   : > { %v2078_v26 = vadd.f32 %v2076_v13, %v2074_v14  ;;  %1921 = vmatmul.f32.vlgmr.msrb.gmra.mxu0 %v1920_v20  ;;  %1975 = vmatpush.msra.mxu2 %v1946_v0 }
 0x349   : > { %2024 = vmatpush.msra.mxu0 %v1941_v18  ;;  %v1943_v15 = vand.u32 4294901760, %v1942_v49  ;;  %v2134_v48 = vsub.f32 %v2132_v29, %v2133_v28  ;;  %v2319_v59 = vand.u32 4294901760, %v2318_v22 }
 0x34a   : > { %v2098_v19 = vand.u32 4294901760, %v2078_v26  ;;  %1978 = vmatmul.f32.vlgmr.msra.gmra.mxu2 %v3558_v41  ;;  %v2262_v21 = vmul.f32 %v2944_v27, %v2078_v26 }
 0x34b   : > { %2028 = vmatpush.msra.mxu0 %v1947_v58  ;;  %1944 = vmatpush.msrb.mxu1 %v1943_v15  ;;  %v2135_v36 = vand.u32 4294901760, %v2134_v48  ;;  %v2320_v52 = vsub.f32 %v2318_v22, %v2319_v59 }
 0x34c   : > { %v2126_v31 = vsub.f32 %v2078_v26, %v2098_v19  ;;  %2099 = vmatpush.msrb.mxu2 %v2098_v19 }
 0x34d   : > { %1950 = vmatpush.msrb.mxu1 %v1949_v4  ;;  %v2081_v35 = vpop.permute.xlu2 %2080  ;;  %v2321_v62 = vand.u32 4294901760, %v2320_v52 }
 0x34e   : > { %v2082_v32 = vsel %vm965_vm10, %v2081_v35, 0  ;;  %2101 = vmatpush.msrb.mxu2 %v3583_v24  ;;  %v2127_v33 = vand.u32 4294901760, %v2126_v31  ;;  %2158 = vmatpush.msrb.mxu0 %v2126_v31 }
 0x34f   : > { %2049 = vmatpush.msra.mxu1 %v1912_v12  ;;  %v2102_v38 = vand.u32 4294901760, %v2082_v32  ;;  %2003 = vmatmul.f32.vlgmr.msra.gmra.mxu3 %v1918_v51 }
 0x350   : > { %1952 = vmatmul.f32.vlgmr.msrb.gmra.mxu1 %v3548_v3  ;;  %2030 = vmatmul.f32.vlgmr.msra.gmra.mxu0 %v3548_v3  ;;  %v2128_v39 = vsub.f32 %v2126_v31, %v2127_v33 }
 0x351   : > { %v2103_v43 = vsub.f32 %v2082_v32, %v2102_v38  ;;  %2051 = vmatpush.msra.mxu1 %v3561_v60  ;;  %2161 = vmatpush.msrb.mxu0 %v2132_v29 }
 0x352   : > { %2210 = vmatpush.msra.mxu2 %v2127_v33  ;;  %v2129_v54 = vand.u32 4294901760, %v2128_v39 }
 0x353   : > { %2183 = vmatpush.msrb.mxu1 %v2098_v19  ;;  %v2104_v55 = vand.u32 4294901760, %v2103_v43 }
 0x354   : > { %2214 = vmatpush.msra.mxu2 %v2133_v28  ;;  %2130 = vmatpush.msrb.mxu3 %v2129_v54 }
 0x355   : > { %2185 = vmatpush.msrb.mxu1 %v3583_v24  ;;  %v2105_v53 = vsub.f32 %v2103_v43, %v2104_v55  ;;  %v2256_v2 = vpop.permute.xlu2 %2255 }
 0x356   : > { %v2260_v44 = vmul.f32 %v2258_v9, %v2256_v2  ;;  %2136 = vmatpush.msrb.mxu3 %v2135_v36  ;;  %v2498_v36 = vld [vmem:[%s3863_s9 + $0x38] sm:$0xff] }
 0x357   : > { %v2106_v34 = vand.u32 4294901760, %v2105_v53  ;;  %2138 = vmatmul.f32.vlgmr.msrb.gmra.mxu3 %v2102_v38 }
 0x358   : > { %v2264_v57 = vadd.f32 %v2262_v21, %v2260_v44  ;;  %2053 = vmatmul.f32.vlgmr.msra.gmra.mxu1 %v3548_v3  ;;  %2164 = vmatmul.f32.vlgmr.msrb.gmra.mxu0 %v2103_v43  ;;  %v2497_v44 = vld [vmem:[%s3863_s9 + $0x30] sm:$0xff] }
 0x359   : > { %2235 = vmatpush.msra.mxu3 %v2098_v19  ;;  %2107 = vmatmul.f32.vlgmr.msrb.gmra.mxu2 %v2106_v34 }
 0x35a   : > { %v2284_v46 = vand.u32 4294901760, %v2264_v57 }
 0x35b   : > { %2237 = vmatpush.msra.mxu3 %v3583_v24 }
 0x35c   : > { %v2312_v30 = vsub.f32 %v2264_v57, %v2284_v46  ;;  %2285 = vmatpush.msra.mxu0 %v2284_v46  ;;  %v3653_v57 = vand.u32 4294901760, %v2498_v36 }
 0x35d   : > { %2369 = vmatpush.msrb.mxu3 %v2284_v46 }
 0x35e   : > { %v2267_v23 = vpop.permute.xlu2 %2266  ;;  %2287 = vmatpush.msra.mxu0 %v2286_v63  ;;  %2344 = vmatpush.msrb.mxu2 %v2312_v30  ;;  %v2313_v56 = vand.u32 4294901760, %v2312_v30 }
 0x35f   : > { %v2268_v41 = vsel %vm965_vm10, %v2267_v23, 0  ;;  %2371 = vmatpush.msrb.mxu3 %v2286_v63 }
 0x360   : > { %v2288_v3 = vand.u32 4294901760, %v2268_v41  ;;  %2189 = vmatmul.f32.vlgmr.msrb.gmra.mxu1 %v2104_v55  ;;  %2239 = vmatmul.f32.vlgmr.msra.gmra.mxu3 %v2102_v38  ;;  %v2314_v61 = vsub.f32 %v2312_v30, %v2313_v56  ;;  %v3661_v30 = vsub.f32 %v2498_v36, %v3653_v57 }
 0x361   : > { %2347 = vmatpush.msrb.mxu2 %v2318_v22  ;;  %2396 = vmatpush.msrb.mxu0 %v2313_v56  ;;  %v3655_v22 = vand.u32 4294901760, %v2497_v44 }
 0x362   : > { %v2289_v60 = vsub.f32 %v2268_v41, %v2288_v3  ;;  %2216 = vmatmul.f32.vlgmr.msra.gmra.mxu2 %v2102_v38  ;;  %v2315_v5 = vand.u32 4294901760, %v2314_v61  ;;  %v2545_v56 = vand.u32 4294901760, %v3661_v30 }
 0x363   : > { %2400 = vmatpush.msrb.mxu0 %v2319_v59  ;;  %v3664_v59 = vsub.f32 %v2497_v44, %v3655_v22  ;;  %2511 = vmatpush.msra.mxu2 %v3653_v57 }
 0x364   : > { %v2290_v42 = vand.u32 4294901760, %v2289_v60  ;;  %2316 = vmatpush.msra.mxu1 %v2315_v5  ;;  %v2546_v52 = vsub.f32 %v3661_v30, %v2545_v56 }
 0x365   : > { %v2551_v41 = vand.u32 4294901760, %v3664_v59  ;;  %2513 = vmatpush.msra.mxu2 %v3655_v22 }
 0x366   : > { %v2291_v6 = vsub.f32 %v2289_v60, %v2290_v42  ;;  %2322 = vmatpush.msra.mxu1 %v2321_v62 }
 0x368   : > { %2421 = vmatpush.msrb.mxu1 %v2284_v46  ;;  %v2292_v7 = vand.u32 4294901760, %v2291_v6  ;;  %2375 = vmatmul.f32.vlgmr.msrb.gmra.mxu3 %v2290_v42  ;;  %v2496_v46 = vld [vmem:[%s3863_s9 + $0x28] sm:$0xff]  ;;  %v2495_v42 = vld [vmem:[%s3863_s9 + $0x20] sm:$0xff] }
 0x369   : > { %2324 = vmatmul.f32.vlgmr.msra.gmra.mxu1 %v2288_v3  ;;  %v3666_v23 = vand.u32 4294901760, %v2496_v46  ;;  %v3694_v6 = vand.u32 4294901760, %v2495_v42 }
 0x36a   : > { %2423 = vmatpush.msrb.mxu1 %v2286_v63  ;;  %2293 = vmatmul.f32.vlgmr.msra.gmra.mxu0 %v2292_v7 }
 0x36b   : > { %2350 = vmatmul.f32.vlgmr.msrb.gmra.mxu2 %v2289_v60  ;;  %2606 = vmatpush.msra.mxu0 %v3661_v30  ;;  %v2552_v60 = vsub.f32 %v3664_v59, %v2551_v41 }
 0x36c   : > { %2643 = vmatpush.msra.mxu1 %v3653_v57  ;;  %2515 = vmatpush.msra.mxu2 %v3666_v23 }
 0x36d   : > { %2609 = vmatpush.msra.mxu0 %v3664_v59 }
 0x36e   : > { %2645 = vmatpush.msra.mxu1 %v3655_v22  ;;  %2517 = vmatpush.msra.mxu2 %v3694_v6 }
 0x370   : > { %2647 = vmatpush.msra.mxu1 %v3666_v23 }
 0x371   : > { %2425 = vmatmul.f32.vlgmr.msrb.gmra.mxu1 %v2288_v3 }
 0x372   : > { %2402 = vmatmul.f32.vlgmr.msrb.gmra.mxu0 %v2288_v3  ;;  %v3673_v3 = vsub.f32 %v2496_v46, %v3666_v23  ;;  %2649 = vmatpush.msra.mxu1 %v3694_v6 }
 0x374   : > { %v2557_v5 = vand.u32 4294901760, %v3673_v3  ;;  %2612 = vmatpush.msra.mxu0 %v3673_v3 }
 0x383   : > { %v992_v40 = vpop.f32.mrf.mxu0 }
 0x389   : > { %v1124_v13 = vpop.f32.mrf.mxu3 }
 0x38b   : > { %v1023_v51 = vpop.f32.mrf.mxu1  ;;  %v1049_v8 = vpop.f32.mrf.mxu0 }
 0x38c   : > { %v1024_v9 = vadd.f32 %v1023_v51, %v992_v40  ;;  %v2547_v51 = vand.u32 4294901760, %v2546_v52 }
 0x38d   : > { %v1101_v10 = vpop.f32.mrf.mxu2 }
 0x38e   : > { %v1050_v0 = vadd.f32 %v1049_v8, %v1024_v9  ;;  %v2553_v8 = vand.u32 4294901760, %v2552_v60  ;;  %v2558_v9 = vsub.f32 %v3673_v3, %v2557_v5  ;;  %2548 = vmatpush.msra.mxu3 %v2547_v51 }
 0x390   : > { %2554 = vmatpush.msra.mxu3 %v2553_v8 }
 0x393   : > { %v1074_v25 = vpop.f32.mrf.mxu1 }
 0x394   : > { %v1075_v11 = vadd.f32 %v1074_v25, %v1050_v0  ;;  %v1178_v12 = vpop.f32.mrf.mxu0  ;;  %v2494_v0 = vld [vmem:[%s3863_s9 + $0x18] sm:$0xff]  ;;  %v3709_v25 = vsub.f32 %v2495_v42, %v3694_v6 }
 0x396   : > { %v1102_v37 = vadd.f32 %v1101_v10, %v1075_v11  ;;  %v3711_v10 = vand.u32 4294901760, %v2494_v0  ;;  %v2559_v11 = vand.u32 4294901760, %v2558_v9  ;;  %2615 = vmatpush.msra.mxu0 %v3709_v25 }
 0x398   : > { %v1125_v16 = vadd.f32 %v1124_v13, %v1102_v37  ;;  %v1260_v18 = vpop.f32.mrf.mxu3  ;;  %v2563_v37 = vand.u32 4294901760, %v3709_v25  ;;  %v3720_v13 = vsub.f32 %v2494_v0, %v3711_v10  ;;  %2519 = vmatpush.msra.mxu2 %v3711_v10  ;;  %2651 = vmatpush.msra.mxu1 %v3711_v10 }
 0x399   : > { %2560 = vmatpush.msra.mxu3 %v2559_v11 }
 0x39a   : > { %v1235_v45 = vpop.f32.mrf.mxu2  ;;  %2618 = vmatpush.msra.mxu0 %v3720_v13 }
 0x39b   : > { %v1209_v50 = vpop.f32.mrf.mxu1 }
 0x39c   : > { %v1210_v58 = vadd.f32 %v1209_v50, %v1178_v12  ;;  %v1287_v24 = vpop.f32.mrf.mxu0  ;;  %v2493_v12 = vld [vmem:[%s3863_s9 + $0x10] sm:$0xff]  ;;  %v2492_v50 = vld [vmem:[%s3863_s9 + $0x8] sm:$0xff] }
 0x39e   : > { %v1236_v17 = vadd.f32 %v1235_v45, %v1210_v58  ;;  %v2491_v45 = vld [vmem:[%s3863_s9] sm:$0xff]  ;;  %v2564_v58 = vsub.f32 %v3709_v25, %v2563_v37 }
 0x3a0   : > { %v1261_v20 = vadd.f32 %v1260_v18, %v1236_v17  ;;  %v3740_v18 = vand.u32 4294901760, %v2492_v50 }
 0x3a2   : > { %v1288_v14 = vadd.f32 %v1287_v24, %v1261_v20  ;;  %v2569_v24 = vand.u32 4294901760, %v3720_v13  ;;  %v3756_v46 = vsub.f32 %v2492_v50, %v3740_v18 }
 0x3a3   : > { %v1310_v49 = vpop.f32.mrf.mxu1  ;;  %v3605_v26 = vpop.f32.mrf.mxu2 }
 0x3a4   : > { %v1311_v1 = vadd.f32 %v1310_v49, %v1288_v14  ;;  %v3607_v27 = vpop.f32.mrf.mxu0  ;;  %v2570_v36 = vsub.f32 %v3720_v13, %v2569_v24  ;;  %v2581_v42 = vand.u32 4294901760, %v3756_v46 }
 0x3a6   : > { %v2430_v15 = vrot.slane %v1311_v1, 7  ;;  %v3748_v1 = vand.u32 4294901760, %v2491_v45  ;;  %v2571_v52 = vand.u32 4294901760, %v2570_v36  ;;  %v2582_v9 = vsub.f32 %v3756_v46, %v2581_v42 }
 0x3a8   : > { %v3609_v29 = vsel %vm2450_vm15, %v1125_v16, %v2430_v15  ;;  %v3611_v19 = vpop.f32.mrf.mxu3  ;;  %v3722_v16 = vand.u32 4294901760, %v2493_v12  ;;  %v2565_v15 = vand.u32 4294901760, %v2564_v58  ;;  %v2583_v50 = vand.u32 4294901760, %v2582_v9 }
 0x3a9   : > { %v1396_v20 = vadd.f32 %v3611_v19, %v3605_v26 }
 0x3aa   : > { %v3738_v17 = vsub.f32 %v2493_v12, %v3722_v16  ;;  %2521 = vmatpush.msra.mxu2 %v3722_v16  ;;  %2653 = vmatpush.msra.mxu1 %v3722_v16 }
 0x3ab   : > { %v3613_v21 = vpop.f32.mrf.mxu1  ;;  %v3615_v4 = vpop.f32.mrf.mxu2  ;;  %2566 = vmatpush.msra.mxu3 %v2565_v15  ;;  %v1422_v51 = vadd.f32 %v3607_v27, %v1396_v20  ;;  %v2896_v15 = vld [vmem:[%s3862_s8] ss:$0 sm:$0xff] }
 0x3ac   : > { %v2575_v44 = vand.u32 4294901760, %v3738_v17  ;;  %2621 = vmatpush.msra.mxu0 %v3738_v17  ;;  %2523 = vmatpush.msra.mxu2 %v3740_v18 }
 0x3ad   : > { %v3617_v31 = vpop.f32.mrf.mxu0  ;;  %2655 = vmatpush.msra.mxu1 %v3740_v18  ;;  %2572 = vmatpush.msra.mxu3 %v2571_v52 }
 0x3ae   : > { %v2576_v60 = vsub.f32 %v3738_v17, %v2575_v44  ;;  %2624 = vmatpush.msra.mxu0 %v3756_v46  ;;  %2525 = vmatpush.msra.mxu2 %v3748_v1 }
 0x3af   : > { %2657 = vmatpush.msra.mxu1 %v3748_v1 }
 0x3b0   : > { %v3619_v35 = vpop.f32.mrf.mxu3  ;;  %2676 = vmatpush.msrb.mxu2 %v2545_v56 }
 0x3b2   : > { %2680 = vmatpush.msrb.mxu2 %v2551_v41 }
 0x3b4   : > { %v3621_v28 = vpop.f32.mrf.mxu1  ;;  %2684 = vmatpush.msrb.mxu2 %v2557_v5 }
 0x3b5   : > { %v3623_v32 = vpop.f32.mrf.mxu2  ;;  %v3625_v33 = vpop.f32.mrf.mxu0  ;;  %v1582_v14 = vadd.f32 %v3621_v28, %v3617_v31  ;;  %v3763_v31 = vsub.f32 %v2491_v45, %v3748_v1 }
 0x3b6   : > { %2688 = vmatpush.msrb.mxu2 %v2563_v37 }
 0x3b7   : > { %v2587_v8 = vand.u32 4294901760, %v3763_v31  ;;  %2627 = vmatpush.msra.mxu0 %v3763_v31 }
 0x3b8   : > { %2692 = vmatpush.msrb.mxu2 %v2569_v24 }
 0x3b9   : > { %v3627_v38 = vpop.f32.mrf.mxu3  ;;  %v2588_v27 = vsub.f32 %v3763_v31, %v2587_v8 }
 0x3ba   : > { %2696 = vmatpush.msrb.mxu2 %v2575_v44 }
 0x3bb   : > { %v2589_v45 = vand.u32 4294901760, %v2588_v27 }
 0x3bc   : > { %v3629_v39 = vpop.f32.mrf.mxu1  ;;  %2700 = vmatpush.msrb.mxu2 %v2581_v42 }
 0x3bd   : > { %v3631_v43 = vpop.f32.mrf.mxu2  ;;  %v3633_v48 = vpop.f32.mrf.mxu0 }
 0x3be   : > { %2704 = vmatpush.msrb.mxu2 %v2587_v8 }
 0x3c1   : > { %v3635_v54 = vpop.f32.mrf.mxu3 }
 0x3c2   : > { %v1768_v26 = vadd.f32 %v3635_v54, %v3631_v43 }
 0x3c4   : > { %v3637_v55 = vpop.f32.mrf.mxu1  ;;  %v1794_v0 = vadd.f32 %v3633_v48, %v1768_v26 }
 0x3c5   : > { %v3639_v63 = vpop.f32.mrf.mxu2  ;;  %v3643_v2 = vpop.f32.mrf.mxu0 }
 0x3c6   : > { %v1819_v48 = vadd.f32 %v3637_v55, %v1794_v0 }
 0x3c8   : > { %v1846_v55 = vadd.f32 %v3639_v63, %v1819_v48 }
 0x3ca   : > { %v3641_v53 = vpop.f32.mrf.mxu3 }
 0x3cb   : > { %v1869_v63 = vadd.f32 %v3641_v53, %v1846_v55 }
 0x3cd   : > { %v3651_v34 = vpop.f32.mrf.mxu1  ;;  %v3692_v62 = vpop.f32.mrf.mxu2 }
 0x3ce   : > { %v3697_v7 = vpop.f32.mrf.mxu0  ;;  %v1954_v28 = vadd.f32 %v3651_v34, %v3643_v2  ;;  %v1608_v2 = vadd.f32 %v3623_v32, %v1582_v14  ;;  %v2577_v34 = vand.u32 4294901760, %v2576_v60  ;;  %v1447_v32 = vadd.f32 %v3613_v21, %v1422_v51 }
 0x3d0   : > { %v1980_v12 = vadd.f32 %v3692_v62, %v1954_v28  ;;  %2578 = vmatpush.msra.mxu3 %v2577_v34  ;;  %v1633_v58 = vadd.f32 %v3627_v38, %v1608_v2  ;;  %v1474_v21 = vadd.f32 %v3615_v4, %v1447_v32  ;;  %v2488_v28 = vpop.permute.xlu2 %2487 }
 0x3d2   : > { %v3677_v61 = vpop.f32.mrf.mxu3  ;;  %2584 = vmatpush.msra.mxu3 %v2583_v50  ;;  %v1660_v38 = vadd.f32 %v3625_v33, %v1633_v58  ;;  %v1497_v4 = vadd.f32 %v3619_v35, %v1474_v21 }
 0x3d3   : > { %v2005_v30 = vadd.f32 %v3677_v61, %v1980_v12 }
 0x3d4   : > { %2590 = vmatpush.msra.mxu3 %v2589_v45  ;;  %v2433_v25 = vrot.slane %v1497_v4, 6 }
 0x3d5   : > { %v3699_v40 = vpop.f32.mrf.mxu1  ;;  %v2032_v3 = vadd.f32 %v3697_v7, %v2005_v30 }
 0x3d6   : > { %v2165_v43 = vpop.f32.mrf.mxu0  ;;  %2719 = vmatpush.msrb.mxu3 %v3653_v57  ;;  %v1683_v57 = vadd.f32 %v3629_v39, %v1660_v38  ;;  %v2439_v39 = vrot.slane %v1869_v63, 4  ;;  %v2453_v24 = vsel %vm2452_vm5, %v3609_v29, %v2433_v25  ;;  %v2464_v29 = vmul.f32 %v2896_v15, %v3298_v47 }
 0x3d8   : > { %2721 = vmatpush.msrb.mxu3 %v3655_v22  ;;  %v2055_v22 = vadd.f32 %v3699_v40, %v2032_v3  ;;  %v2436_v35 = vrot.slane %v1683_v57, 5 }
 0x3da   : > { %v2139_v49 = vpop.f32.mrf.mxu3  ;;  %2723 = vmatpush.msrb.mxu3 %v3666_v23  ;;  %v2442_v53 = vrot.slane %v2055_v22, 3 }
 0x3dc   : > { %v2108_v19 = vpop.f32.mrf.mxu2  ;;  %2725 = vmatpush.msrb.mxu3 %v3694_v6 }
 0x3dd   : > { %v2190_v54 = vpop.f32.mrf.mxu1  ;;  %v2140_v11 = vadd.f32 %v2139_v49, %v2108_v19 }
 0x3de   : > { %2727 = vmatpush.msrb.mxu3 %v3711_v10  ;;  %v2454_v10 = vsel %vm554_vm1, %v2453_v24, %v2436_v35 }
 0x3df   : > { %v2166_v17 = vadd.f32 %v2165_v43, %v2140_v11  ;;  %v2456_v44 = vsel %vm2455_vm6, %v2454_v10, %v2439_v39 }
 0x3e0   : > { %2729 = vmatpush.msrb.mxu3 %v3722_v16  ;;  %v2457_v16 = vsel %vm590_vm4, %v2456_v44, %v2442_v53 }
 0x3e1   : > { %v2191_v59 = vadd.f32 %v2190_v54, %v2166_v17 }
 0x3e2   : > { %2731 = vmatpush.msrb.mxu3 %v3740_v18 }
 0x3e3   : > { %v2240_v20 = vpop.f32.mrf.mxu3 }
 0x3e4   : > { %2733 = vmatpush.msrb.mxu3 %v3748_v1 }
 0x3e5   : > { %v2217_v14 = vpop.f32.mrf.mxu2 }
 0x3e6   : > { %v2325_v41 = vpop.f32.mrf.mxu1  ;;  %v2218_v61 = vadd.f32 %v2217_v14, %v2191_v59 }
 0x3e7   : > { %v2294_v56 = vpop.f32.mrf.mxu0 }
 0x3e8   : > { %v2326_v33 = vadd.f32 %v2325_v41, %v2294_v56  ;;  %v2241_v7 = vadd.f32 %v2240_v20, %v2218_v61 }
 0x3ea   : > { %v2445_v40 = vrot.slane %v2241_v7, 2 }
 0x3eb   : > { %v2376_v37 = vpop.f32.mrf.mxu3 }
 0x3ec   : > { %v2458_v26 = vsel %vm579_vm3, %v2457_v16, %v2445_v40 }
 0x3ee   : > { %v2351_v5 = vpop.f32.mrf.mxu2  ;;  %v2426_v49 = vpop.f32.mrf.mxu1 }
 0x3ef   : > { %v2352_v62 = vadd.f32 %v2351_v5, %v2326_v33  ;;  %v2403_v13 = vpop.f32.mrf.mxu0 }
 0x3f1   : > { %v2377_v23 = vadd.f32 %v2376_v37, %v2352_v62 }
 0x3f3   : > { %v2404_v6 = vadd.f32 %v2403_v13, %v2377_v23 }
 0x3f5   : > { %v2427_v36 = vadd.f32 %v2426_v49, %v2404_v6 }
 0x3f7   : > { %v2448_v46 = vrot.slane %v2427_v36, 1 }
 0x3f9   : > { %v2459_v19 = vsel %vm568_vm2, %v2458_v26, %v2448_v46 }
 0x3fa   : > { %v2465_v31 = vadd.f32 %v2464_v29, %v2459_v19 }
 0x3fc   : > { %v2490_v52 = vmul.f32 %v2488_v28, %v2465_v31 }
 0x3fe   : > { %v2500_v18 = vsel %vm624_vm9, %v2490_v52, 0 }
 0x3ff   : > { %v2526_v60 = vand.u32 4294901760, %v2500_v18 }
 0x401   : > { %2592 = vmatmul.f32.vlgmr.msra.gmra.mxu3 %v2526_v60  ;;  %v2527_v42 = vsub.f32 %v2500_v18, %v2526_v60 }
 0x403   : > { %2630 = vmatmul.f32.vlgmr.msra.gmra.mxu0 %v2527_v42  ;;  %v2528_v1 = vand.u32 4294901760, %v2527_v42 }
 0x405   : > { %2661 = vmatmul.f32.vlgmr.msra.gmra.mxu1 %v2528_v1  ;;  %v2529_v51 = vsub.f32 %v2527_v42, %v2528_v1 }
 0x407   : > { %v2530_v43 = vand.u32 4294901760, %v2529_v51 }
 0x409   : > { %2531 = vmatmul.f32.vlgmr.msra.gmra.mxu2 %v2530_v43  ;;  %2735 = vmatmul.f32.vlgmr.msrb.gmra.mxu3 %v2526_v60 }
 0x411   : > { %2706 = vmatmul.f32.vlgmr.msrb.gmra.mxu2 %v2526_v60 }
 0x480   : > { %v2631_v2 = vpop.f32.mrf.mxu0 }
 0x482   : > { %v2662_v9 = vpop.f32.mrf.mxu1 }
 0x484   : > { %v2593_v47 = vpop.f32.mrf.mxu3 }
 0x48c   : > { %v2532_v54 = vpop.f32.mrf.mxu2  ;;  %v2736_v12 = vpop.f32.mrf.mxu3 }
 0x48d   : > { %v2594_v8 = vadd.f32 %v2593_v47, %v2532_v54 }
 0x48f   : > { %v2632_v34 = vadd.f32 %v2631_v2, %v2594_v8 }
 0x491   : > { %v2663_v0 = vadd.f32 %v2662_v9, %v2632_v34 }
 0x494   : > { %v2707_v11 = vpop.f32.mrf.mxu2 }
 0x495   : > { %v2708_v27 = vadd.f32 %v2707_v11, %v2663_v0 }
 0x497   : > { %v2737_v50 = vadd.f32 %v2736_v12, %v2708_v27 }
 0x499   : > { %2739 = vst.msk [vmem:[%s350_s27] sm:$0xff] %vm360_vm0, %v2737_v50 }
 0x49a   : > { %2972 = shalt.err (!%p2969_p3)
}
 0x49b   : > { %2825 = dma.vmem_to_hbm [thread:$0]  (%p3113_p5), %s2754_s28, 128, %s2756_s29, %s2741_s17  }
 0x49c PF: > { %p2831_p4 = scmp.ge.s32.totalorder %s3007_s16, 2  ;;  %s2767_s12 = sand.u32 1, %s2995_s13  }
 0x49d   : > { %s2768_s27 = scalar_lea.sflag [#allocation3], %s2767_s12 }
 0x49e   : > { %p2828_p7 = pnand %p2831_p4, %p3117_p6 }
 0x4a0   : > { %p2829_p8 = pneg %p2828_p7 }
 0x4a2   : > { %2990 = dma.done.wait (%p2829_p8), %s2768_s27, 128  }
 0x4a3   : > { %2992 = vsyncadd (%p2829_p8), %s2768_s27, 4294967168  ;;  %p20_p9 = scmp.ge.s32.totalorder %s3100_s19, 4   ;;  %s3869_s13 = smov %s2999_s14 }
 0x4a4   : > { %s3870_s14 = smov %s3003_s15  ;;  %s3871_s15 = smov %s3111_s22 }
 0x4a5   : > { %s3872_s16 = smov %s3100_s19  ;;  %22 = sbr.rel (!%p20_p9) target bundleno = 3 (0x3), region = 95 }
 0x4aa   :  { %2774 = vsyncpa [#allocation3], 1 }
 0x4ab   :  { %2776 = vsyncpa [#allocation3 + $0x1], 1 }

</bundles_post_ra>
